<compile_context>
chip_gen: v6e
topology: v6e:2x2x1
jax: 0.10.0
libtpu: 0.0.40
codegen_flags: <defaults>
</compile_context>

<pallas_src>
import math

import jax
import jax.numpy as jnp
from jax import lax
from jax.experimental import pallas as pl
from jax.experimental.pallas import tpu as pltpu

# ----------------------------- tiny BERT config ------------------------------
VOCAB = 128
HIDDEN = 32
N_HEADS = 2
HEAD_DIM = HIDDEN // N_HEADS
N_LAYERS = 2
INTERMEDIATE = 64
MAX_POS = 16
LN_EPS = 1e-12

BATCH = 2
SEQ = 8

_ATTN_SCALE = 1.0 / math.sqrt(HEAD_DIM)

# -------------------- packed parameter slabs (static layout) ------------------
# f32 vector slab (24, 128): one row per bias / LayerNorm vector.
V_EMB_LN_G, V_EMB_LN_B = 0, 1
V_LAYER0 = 2
(V_QKV_B, V_O_B, V_ATT_LN_G, V_ATT_LN_B,
 V_I_B, V_F_B, V_FFN_LN_G, V_FFN_LN_B) = range(8)          # per-layer row offsets
V_PER_LAYER = 8
V_MLM_T_B = V_LAYER0 + N_LAYERS * V_PER_LAYER               # 18
V_MLM_LN_G = V_MLM_T_B + 1                                  # 19
V_MLM_LN_B = V_MLM_T_B + 2                                  # 20
V_DEC_B = V_MLM_T_B + 3                                      # 21
V_ROWS, V_LANES = 24, 128

# bf16 weight slab (384, 128): matmul weights stacked along the K (row) axis,
# lane-padded to 128; all row offsets are multiples of 16 (bf16 sublane tile).
W_QKV, W_O, W_I, W_F = 0, HIDDEN, 2 * HIDDEN, 3 * HIDDEN
W_PER_LAYER = 3 * HIDDEN + INTERMEDIATE                      # 160 rows / layer
W_MLM_T = N_LAYERS * W_PER_LAYER                              # 320
W_DEC = W_MLM_T + HIDDEN                                      # 352 (pre-transposed (H, V))
W_ROWS, W_LANES = W_DEC + HIDDEN, 128                         # 384


# --------------------------- in-kernel math helpers ---------------------------
def _gelu(x):
    # TODO(synk): HF BERT uses exact erf-GELU; tanh approximation used here for
    # guaranteed Mosaic lowering (relative difference < 1e-3).
    c = math.sqrt(2.0 / math.pi)
    return 0.5 * x * (1.0 + jnp.tanh(c * (x + 0.044715 * x * x * x)))


def _layernorm(x, g, b):
    mu = jnp.mean(x, axis=-1, keepdims=True)
    var = jnp.mean(jnp.square(x - mu), axis=-1, keepdims=True)
    return (x - mu) * lax.rsqrt(var + LN_EPS) * g + b


def _mm(x_f32, w_bf16, b_f32=None):
    # bf16 operands into the MXU, f32 accumulation; elementwise math stays f32.
    y = jnp.dot(x_f32.astype(jnp.bfloat16), w_bf16,
                preferred_element_type=jnp.float32)
    if b_f32 is not None:
        y = y + b_f32
    return y


# ------------------------------ fused BERT kernel -----------------------------
def _bert_fused_kernel(emb_ref, bias_ref, vec_ref, w_ref, out_ref):
    def vrow(row, width=HIDDEN):
        return vec_ref[row:row + 1, 0:width]              # (1, width) f32, static slice

    def wmat(row, nrows, ncols):
        return w_ref[row:row + nrows, 0:ncols]            # (nrows, ncols) bf16, static slice

    bias = bias_ref[...]                                  # (T, T) f32 additive mask bias

    # ---- embedding LayerNorm ----
    h = _layernorm(emb_ref[...], vrow(V_EMB_LN_G), vrow(V_EMB_LN_B))

    # ---- transformer layers; every intermediate stays VMEM/vreg resident ----
    for l in range(N_LAYERS):
        wbase = l * W_PER_LAYER
        vbase = V_LAYER0 + l * V_PER_LAYER

        # fused QKV projection (one MXU pass), then a SINGLE bf16 pack.
        qkv = _mm(h, wmat(wbase + W_QKV, HIDDEN, 3 * HIDDEN),
                  vrow(vbase + V_QKV_B, 3 * HIDDEN))       # (T, 3H) f32
        qkv_bf = qkv.astype(jnp.bfloat16)

        o_w = wmat(wbase + W_O, HIDDEN, HIDDEN)            # (H, H) bf16

        # flat all-batch attention per head; bias already blocks cross-batch
        # keys.  Output projection folded per head -> no ctx scratch / stores.
        attn = None
        for hd in range(N_HEADS):
            c0 = hd * HEAD_DIM
            q = qkv_bf[:, c0:c0 + HEAD_DIM]
            k = qkv_bf[:, HIDDEN + c0:HIDDEN + c0 + HEAD_DIM]
            v = qkv_bf[:, 2 * HIDDEN + c0:2 * HIDDEN + c0 + HEAD_DIM]
            s = lax.dot_general(q, k, (((1,), (1,)), ((), ())),
                                preferred_element_type=jnp.float32) * _ATTN_SCALE
            s = s + bias
            m = jnp.max(s, axis=-1, keepdims=True)
            p = jnp.exp(s - m)                             # f32 softmax
            denom = jnp.sum(p, axis=-1, keepdims=True)
            p = p * pl.reciprocal(denom, approx=True)      # EUP slot (free-ish)
            ctx = jnp.dot(p.astype(jnp.bfloat16), v,
                          preferred_element_type=jnp.float32)          # (T, HD)
            head_out = jnp.dot(ctx.astype(jnp.bfloat16),
                               o_w[c0:c0 + HEAD_DIM, :],
                               preferred_element_type=jnp.float32)     # (T, H)
            attn = head_out if attn is None else attn + head_out
        attn = attn + vrow(vbase + V_O_B)
        h = _layernorm(attn + h,
                       vrow(vbase + V_ATT_LN_G), vrow(vbase + V_ATT_LN_B))

        # FFN
        ffn = _gelu(_mm(h, wmat(wbase + W_I, HIDDEN, INTERMEDIATE),
                        vrow(vbase + V_I_B, INTERMEDIATE)))
        ffn = _mm(ffn, wmat(wbase + W_F, INTERMEDIATE, HIDDEN),
                  vrow(vbase + V_F_B))
        h = _layernorm(ffn + h,
                       vrow(vbase + V_FFN_LN_G), vrow(vbase + V_FFN_LN_B))

    # ---- MLM head: transform (dense + GELU + LN) then tied decoder ----
    t = _gelu(_mm(h, wmat(W_MLM_T, HIDDEN, HIDDEN), vrow(V_MLM_T_B)))
    t = _layernorm(t, vrow(V_MLM_LN_G), vrow(V_MLM_LN_B))
    # tied decoder against pre-transposed (H, V) weight: lane-dense (T, 128) out
    out_ref[...] = _mm(t, wmat(W_DEC, HIDDEN, VOCAB), vrow(V_DEC_B, VOCAB))


# ------------------------------ parameter init -------------------------------
def init_params(key):
    std = 0.02
    ks = iter(jax.random.split(key, 3 + 6 * N_LAYERS + 1))

    def dense(fan_in, fan_out):
        return jax.random.normal(next(ks), (fan_in, fan_out), jnp.float32) * std

    word_emb = jax.random.normal(next(ks), (VOCAB, HIDDEN), jnp.float32) * std
    pos_emb = jax.random.normal(next(ks), (MAX_POS, HIDDEN), jnp.float32) * std
    type_emb = jax.random.normal(next(ks), (2, HIDDEN), jnp.float32) * std

    # packed f32 vector slab: biases zero, LayerNorm gammas one.
    vec = jnp.zeros((V_ROWS, V_LANES), jnp.float32)
    gamma_rows = [V_EMB_LN_G, V_MLM_LN_G]
    for l in range(N_LAYERS):
        base = V_LAYER0 + l * V_PER_LAYER
        gamma_rows += [base + V_ATT_LN_G, base + V_FFN_LN_G]
    for r in gamma_rows:
        vec = vec.at[r, 0:HIDDEN].set(1.0)

    # packed weight slab (built in f32, cast to bf16 once).
    w = jnp.zeros((W_ROWS, W_LANES), jnp.float32)
    for l in range(N_LAYERS):
        base = l * W_PER_LAYER
        q, k, v = dense(HIDDEN, HIDDEN), dense(HIDDEN, HIDDEN), dense(HIDDEN, HIDDEN)
        w = w.at[base + W_QKV:base + W_QKV + HIDDEN, 0:3 * HIDDEN].set(
            jnp.concatenate([q, k, v], axis=1))            # fused (H, 3H)
        w = w.at[base + W_O:base + W_O + HIDDEN, 0:HIDDEN].set(dense(HIDDEN, HIDDEN))
        w = w.at[base + W_I:base + W_I + HIDDEN, 0:INTERMEDIATE].set(
            dense(HIDDEN, INTERMEDIATE))
        w = w.at[base + W_F:base + W_F + INTERMEDIATE, 0:HIDDEN].set(
            dense(INTERMEDIATE, HIDDEN))
    w = w.at[W_MLM_T:W_MLM_T + HIDDEN, 0:HIDDEN].set(dense(HIDDEN, HIDDEN))
    # tied decoder: word embedding pre-transposed to (H, V) at init.
    w = w.at[W_DEC:W_DEC + HIDDEN, 0:VOCAB].set(word_emb.T)

    return {
        "word_emb": word_emb,                # f32, used for the gathers
        "pos_emb": pos_emb,
        "type_emb": type_emb,
        "vec_slab": vec,                     # (24, 128)  f32
        "w_slab": w.astype(jnp.bfloat16),    # (384, 128) bf16
    }


# ------------------------------- model forward -------------------------------
def bert_mlm_forward(params, input_id, mask):
    """Matches BertMLM.forward(input_id, mask) -> (prediction_scores,)."""
    B, S = input_id.shape
    T = B * S

    # embeddings (gathers are plain-JAX glue; everything else is one kernel)
    we = jnp.take(params["word_emb"], input_id, axis=0)        # (B, S, H)
    pe = params["pos_emb"][:S]                                  # (S, H)
    te = jnp.take(params["type_emb"], jnp.zeros((B, S), jnp.int32), axis=0)
    emb = (we + pe[None, :, :] + te).reshape(T, HIDDEN)         # (T, H)

    # (T, T) additive attention bias: padding-mask bias on same-batch keys,
    # -1e9 on cross-batch keys (exp underflows to exactly 0 -> identical to
    # per-batch softmax, but lets all batches share one flat matmul per head).
    key_bias = ((1.0 - mask.astype(jnp.float32)) * -10000.0).reshape(1, T)
    batch_ids = jnp.repeat(jnp.arange(B, dtype=jnp.int32), S)
    same_batch = batch_ids[:, None] == batch_ids[None, :]
    bias = jnp.where(same_batch, key_bias, jnp.float32(-1e9))   # (T, T)

    vmem = pl.BlockSpec(memory_space=pltpu.MemorySpace.VMEM)
    logits = pl.pallas_call(
        _bert_fused_kernel,
        out_shape=jax.ShapeDtypeStruct((T, VOCAB), jnp.float32),
        in_specs=[vmem] * 4,
        out_specs=vmem,
    )(emb, bias, params["vec_slab"], params["w_slab"])
    prediction_scores = logits.reshape(B, S, VOCAB)
    return (prediction_scores,)   # tuple, mirroring return_dict=False


# ------------------------------------ main ------------------------------------
if __name__ == "__main__":
    key = jax.random.PRNGKey(0)
    k_param, k_ids, k_mask = jax.random.split(key, 3)

    params = init_params(k_param)
    input_id = jax.random.randint(k_ids, (BATCH, SEQ), 0, VOCAB, dtype=jnp.int32)
    # attention mask: 1 = attend, 0 = padding (last two tokens of batch 1 padded)
    mask = jnp.ones((BATCH, SEQ), jnp.int32).at[1, -2:].set(0)

    fwd = jax.jit(bert_mlm_forward)
    (scores,) = fwd(params, input_id, mask)
    scores = jax.block_until_ready(scores)

    assert scores.shape == (BATCH, SEQ, VOCAB), scores.shape
    assert bool(jnp.all(jnp.isfinite(scores)))
    print("KERNEL_OK")
</pallas_src>

<mosaic_0001>
module attributes {stable_mosaic.version = 11 : i64} {
  func.func @_bert_fused_kernel(%arg0: memref<16x32xf32, #tpu.memory_space<vmem>>, %arg1: memref<16x16xf32, #tpu.memory_space<vmem>>, %arg2: memref<24x128xf32, #tpu.memory_space<vmem>>, %arg3: memref<384x128xbf16, #tpu.memory_space<vmem>>, %arg4: memref<16x128xf32, #tpu.memory_space<vmem>>) attributes {dimension_semantics = [], scalar_prefetch = 0 : i64, scratch_operands = 0 : i64, tpu.core_type = #tpu.core_type<tc>} {
    %c0 = arith.constant 0 : index
    %c0_0 = arith.constant 0 : index
    %0 = vector.load %arg1[%c0, %c0_0] : memref<16x16xf32, #tpu.memory_space<vmem>>, vector<16x16xf32>
    %c0_1 = arith.constant 0 : index
    %c0_2 = arith.constant 0 : index
    %1 = vector.load %arg0[%c0_1, %c0_2] : memref<16x32xf32, #tpu.memory_space<vmem>>, vector<16x32xf32>
    %c0_3 = arith.constant 0 : index
    %c0_4 = arith.constant 0 : index
    %2 = vector.load %arg2[%c0_3, %c0_4] : memref<24x128xf32, #tpu.memory_space<vmem>>, vector<1x32xf32>
    %c1 = arith.constant 1 : index
    %c0_5 = arith.constant 0 : index
    %3 = vector.load %arg2[%c1, %c0_5] : memref<24x128xf32, #tpu.memory_space<vmem>>, vector<1x32xf32>
    %cst = arith.constant dense<0.000000e+00> : vector<16xf32>
    %4 = vector.multi_reduction <add>, %1, %cst [1] : vector<16x32xf32> to vector<16xf32>
    %5 = vector.shape_cast %4 : vector<16xf32> to vector<16x1xf32>
    %cst_6 = arith.constant 3.200000e+01 : f32
    %6 = vector.broadcast %cst_6 : f32 to vector<16x1xf32>
    %7 = arith.divf %5, %6 : vector<16x1xf32>
    %8 = vector.broadcast %7 : vector<16x1xf32> to vector<16x32xf32>
    %9 = arith.subf %1, %8 : vector<16x32xf32>
    %10 = arith.mulf %9, %9 : vector<16x32xf32>
    %cst_7 = arith.constant dense<0.000000e+00> : vector<16xf32>
    %11 = vector.multi_reduction <add>, %10, %cst_7 [1] : vector<16x32xf32> to vector<16xf32>
    %12 = vector.shape_cast %11 : vector<16xf32> to vector<16x1xf32>
    %cst_8 = arith.constant 3.200000e+01 : f32
    %13 = vector.broadcast %cst_8 : f32 to vector<16x1xf32>
    %14 = arith.divf %12, %13 : vector<16x1xf32>
    %15 = vector.broadcast %7 : vector<16x1xf32> to vector<16x32xf32>
    %16 = arith.subf %1, %15 : vector<16x32xf32>
    %cst_9 = arith.constant 9.99999996E-13 : f32
    %17 = vector.broadcast %cst_9 : f32 to vector<16x1xf32>
    %18 = arith.addf %14, %17 : vector<16x1xf32>
    %19 = math.rsqrt %18 : vector<16x1xf32>
    %20 = vector.broadcast %19 : vector<16x1xf32> to vector<16x32xf32>
    %21 = arith.mulf %16, %20 : vector<16x32xf32>
    %22 = vector.broadcast %2 : vector<1x32xf32> to vector<16x32xf32>
    %23 = arith.mulf %21, %22 : vector<16x32xf32>
    %24 = vector.broadcast %3 : vector<1x32xf32> to vector<16x32xf32>
    %25 = arith.addf %23, %24 : vector<16x32xf32>
    %c0_10 = arith.constant 0 : index
    %c0_11 = arith.constant 0 : index
    %26 = vector.load %arg3[%c0_10, %c0_11] : memref<384x128xbf16, #tpu.memory_space<vmem>>, vector<32x96xbf16>
    %c2 = arith.constant 2 : index
    %c0_12 = arith.constant 0 : index
    %27 = vector.load %arg2[%c2, %c0_12] : memref<24x128xf32, #tpu.memory_space<vmem>>, vector<1x96xf32>
    %28 = arith.truncf %25 : vector<16x32xf32> to vector<16x32xbf16>
    %cst_13 = arith.constant dense<0.000000e+00> : vector<16x96xf32>
    %29 = tpu.matmul %28, %26, %cst_13 {dimension_numbers = #tpu.dot_dimension_numbers<[1], [0], [0], [1], [0, 0, 1, 1], [], []>} : vector<16x32xbf16>, vector<32x96xbf16>, vector<16x96xf32> -> vector<16x96xf32>
    %30 = vector.broadcast %27 : vector<1x96xf32> to vector<16x96xf32>
    %31 = arith.addf %29, %30 : vector<16x96xf32>
    %32 = arith.truncf %31 : vector<16x96xf32> to vector<16x96xbf16>
    %c32 = arith.constant 32 : index
    %c0_14 = arith.constant 0 : index
    %33 = vector.load %arg3[%c32, %c0_14] : memref<384x128xbf16, #tpu.memory_space<vmem>>, vector<32x32xbf16>
    %34 = vector.extract_strided_slice %32 {offsets = [0, 0], sizes = [16, 16], strides = [1, 1]} : vector<16x96xbf16> to vector<16x16xbf16>
    %35 = vector.extract_strided_slice %32 {offsets = [0, 32], sizes = [16, 16], strides = [1, 1]} : vector<16x96xbf16> to vector<16x16xbf16>
    %36 = vector.extract_strided_slice %32 {offsets = [0, 64], sizes = [16, 16], strides = [1, 1]} : vector<16x96xbf16> to vector<16x16xbf16>
    %cst_15 = arith.constant dense<0.000000e+00> : vector<16x16xf32>
    %37 = tpu.matmul %34, %35, %cst_15 {dimension_numbers = #tpu.dot_dimension_numbers<[1], [1], [0], [0], [0, 0, 1, 0], [], []>} : vector<16x16xbf16>, vector<16x16xbf16>, vector<16x16xf32> -> vector<16x16xf32>
    %cst_16 = arith.constant 2.500000e-01 : f32
    %38 = vector.broadcast %cst_16 : f32 to vector<16x16xf32>
    %39 = arith.mulf %37, %38 : vector<16x16xf32>
    %40 = arith.addf %39, %0 : vector<16x16xf32>
    %cst_17 = arith.constant dense<0xFF800000> : vector<16xf32>
    %41 = vector.multi_reduction <maximumf>, %40, %cst_17 [1] : vector<16x16xf32> to vector<16xf32>
    %42 = vector.shape_cast %41 : vector<16xf32> to vector<16x1xf32>
    %43 = vector.broadcast %42 : vector<16x1xf32> to vector<16x16xf32>
    %44 = arith.subf %40, %43 : vector<16x16xf32>
    %45 = math.exp %44 : vector<16x16xf32>
    %cst_18 = arith.constant dense<0.000000e+00> : vector<16xf32>
    %46 = vector.multi_reduction <add>, %45, %cst_18 [1] : vector<16x16xf32> to vector<16xf32>
    %47 = vector.shape_cast %46 : vector<16xf32> to vector<16x1xf32>
    %48 = tpu.reciprocal %47 {approx = true} : vector<16x1xf32> -> vector<16x1xf32>
    %49 = vector.broadcast %48 : vector<16x1xf32> to vector<16x16xf32>
    %50 = arith.mulf %45, %49 : vector<16x16xf32>
    %51 = arith.truncf %50 : vector<16x16xf32> to vector<16x16xbf16>
    %cst_19 = arith.constant dense<0.000000e+00> : vector<16x16xf32>
    %52 = tpu.matmul %51, %36, %cst_19 {dimension_numbers = #tpu.dot_dimension_numbers<[1], [0], [0], [1], [0, 0, 1, 1], [], []>} : vector<16x16xbf16>, vector<16x16xbf16>, vector<16x16xf32> -> vector<16x16xf32>
    %53 = arith.truncf %52 : vector<16x16xf32> to vector<16x16xbf16>
    %54 = vector.extract_strided_slice %33 {offsets = [0, 0], sizes = [16, 32], strides = [1, 1]} : vector<32x32xbf16> to vector<16x32xbf16>
    %cst_20 = arith.constant dense<0.000000e+00> : vector<16x32xf32>
    %55 = tpu.matmul %53, %54, %cst_20 {dimension_numbers = #tpu.dot_dimension_numbers<[1], [0], [0], [1], [0, 0, 1, 1], [], []>} : vector<16x16xbf16>, vector<16x32xbf16>, vector<16x32xf32> -> vector<16x32xf32>
    %56 = vector.extract_strided_slice %32 {offsets = [0, 16], sizes = [16, 16], strides = [1, 1]} : vector<16x96xbf16> to vector<16x16xbf16>
    %57 = vector.extract_strided_slice %32 {offsets = [0, 48], sizes = [16, 16], strides = [1, 1]} : vector<16x96xbf16> to vector<16x16xbf16>
    %58 = vector.extract_strided_slice %32 {offsets = [0, 80], sizes = [16, 16], strides = [1, 1]} : vector<16x96xbf16> to vector<16x16xbf16>
    %cst_21 = arith.constant dense<0.000000e+00> : vector<16x16xf32>
    %59 = tpu.matmul %56, %57, %cst_21 {dimension_numbers = #tpu.dot_dimension_numbers<[1], [1], [0], [0], [0, 0, 1, 0], [], []>} : vector<16x16xbf16>, vector<16x16xbf16>, vector<16x16xf32> -> vector<16x16xf32>
    %cst_22 = arith.constant 2.500000e-01 : f32
    %60 = vector.broadcast %cst_22 : f32 to vector<16x16xf32>
    %61 = arith.mulf %59, %60 : vector<16x16xf32>
    %62 = arith.addf %61, %0 : vector<16x16xf32>
    %cst_23 = arith.constant dense<0xFF800000> : vector<16xf32>
    %63 = vector.multi_reduction <maximumf>, %62, %cst_23 [1] : vector<16x16xf32> to vector<16xf32>
    %64 = vector.shape_cast %63 : vector<16xf32> to vector<16x1xf32>
    %65 = vector.broadcast %64 : vector<16x1xf32> to vector<16x16xf32>
    %66 = arith.subf %62, %65 : vector<16x16xf32>
    %67 = math.exp %66 : vector<16x16xf32>
    %cst_24 = arith.constant dense<0.000000e+00> : vector<16xf32>
    %68 = vector.multi_reduction <add>, %67, %cst_24 [1] : vector<16x16xf32> to vector<16xf32>
    %69 = vector.shape_cast %68 : vector<16xf32> to vector<16x1xf32>
    %70 = tpu.reciprocal %69 {approx = true} : vector<16x1xf32> -> vector<16x1xf32>
    %71 = vector.broadcast %70 : vector<16x1xf32> to vector<16x16xf32>
    %72 = arith.mulf %67, %71 : vector<16x16xf32>
    %73 = arith.truncf %72 : vector<16x16xf32> to vector<16x16xbf16>
    %cst_25 = arith.constant dense<0.000000e+00> : vector<16x16xf32>
    %74 = tpu.matmul %73, %58, %cst_25 {dimension_numbers = #tpu.dot_dimension_numbers<[1], [0], [0], [1], [0, 0, 1, 1], [], []>} : vector<16x16xbf16>, vector<16x16xbf16>, vector<16x16xf32> -> vector<16x16xf32>
    %75 = arith.truncf %74 : vector<16x16xf32> to vector<16x16xbf16>
    %76 = vector.extract_strided_slice %33 {offsets = [16, 0], sizes = [16, 32], strides = [1, 1]} : vector<32x32xbf16> to vector<16x32xbf16>
    %cst_26 = arith.constant dense<0.000000e+00> : vector<16x32xf32>
    %77 = tpu.matmul %75, %76, %cst_26 {dimension_numbers = #tpu.dot_dimension_numbers<[1], [0], [0], [1], [0, 0, 1, 1], [], []>} : vector<16x16xbf16>, vector<16x32xbf16>, vector<16x32xf32> -> vector<16x32xf32>
    %78 = arith.addf %55, %77 : vector<16x32xf32>
    %c3 = arith.constant 3 : index
    %c0_27 = arith.constant 0 : index
    %79 = vector.load %arg2[%c3, %c0_27] : memref<24x128xf32, #tpu.memory_space<vmem>>, vector<1x32xf32>
    %80 = vector.broadcast %79 : vector<1x32xf32> to vector<16x32xf32>
    %81 = arith.addf %78, %80 : vector<16x32xf32>
    %82 = arith.addf %81, %25 : vector<16x32xf32>
    %c4 = arith.constant 4 : index
    %c0_28 = arith.constant 0 : index
    %83 = vector.load %arg2[%c4, %c0_28] : memref<24x128xf32, #tpu.memory_space<vmem>>, vector<1x32xf32>
    %c5 = arith.constant 5 : index
    %c0_29 = arith.constant 0 : index
    %84 = vector.load %arg2[%c5, %c0_29] : memref<24x128xf32, #tpu.memory_space<vmem>>, vector<1x32xf32>
    %cst_30 = arith.constant dense<0.000000e+00> : vector<16xf32>
    %85 = vector.multi_reduction <add>, %82, %cst_30 [1] : vector<16x32xf32> to vector<16xf32>
    %86 = vector.shape_cast %85 : vector<16xf32> to vector<16x1xf32>
    %cst_31 = arith.constant 3.200000e+01 : f32
    %87 = vector.broadcast %cst_31 : f32 to vector<16x1xf32>
    %88 = arith.divf %86, %87 : vector<16x1xf32>
    %89 = vector.broadcast %88 : vector<16x1xf32> to vector<16x32xf32>
    %90 = arith.subf %82, %89 : vector<16x32xf32>
    %91 = arith.mulf %90, %90 : vector<16x32xf32>
    %cst_32 = arith.constant dense<0.000000e+00> : vector<16xf32>
    %92 = vector.multi_reduction <add>, %91, %cst_32 [1] : vector<16x32xf32> to vector<16xf32>
    %93 = vector.shape_cast %92 : vector<16xf32> to vector<16x1xf32>
    %cst_33 = arith.constant 3.200000e+01 : f32
    %94 = vector.broadcast %cst_33 : f32 to vector<16x1xf32>
    %95 = arith.divf %93, %94 : vector<16x1xf32>
    %96 = vector.broadcast %88 : vector<16x1xf32> to vector<16x32xf32>
    %97 = arith.subf %82, %96 : vector<16x32xf32>
    %cst_34 = arith.constant 9.99999996E-13 : f32
    %98 = vector.broadcast %cst_34 : f32 to vector<16x1xf32>
    %99 = arith.addf %95, %98 : vector<16x1xf32>
    %100 = math.rsqrt %99 : vector<16x1xf32>
    %101 = vector.broadcast %100 : vector<16x1xf32> to vector<16x32xf32>
    %102 = arith.mulf %97, %101 : vector<16x32xf32>
    %103 = vector.broadcast %83 : vector<1x32xf32> to vector<16x32xf32>
    %104 = arith.mulf %102, %103 : vector<16x32xf32>
    %105 = vector.broadcast %84 : vector<1x32xf32> to vector<16x32xf32>
    %106 = arith.addf %104, %105 : vector<16x32xf32>
    %c64 = arith.constant 64 : index
    %c0_35 = arith.constant 0 : index
    %107 = vector.load %arg3[%c64, %c0_35] : memref<384x128xbf16, #tpu.memory_space<vmem>>, vector<32x64xbf16>
    %c6 = arith.constant 6 : index
    %c0_36 = arith.constant 0 : index
    %108 = vector.load %arg2[%c6, %c0_36] : memref<24x128xf32, #tpu.memory_space<vmem>>, vector<1x64xf32>
    %109 = arith.truncf %106 : vector<16x32xf32> to vector<16x32xbf16>
    %cst_37 = arith.constant dense<0.000000e+00> : vector<16x64xf32>
    %110 = tpu.matmul %109, %107, %cst_37 {dimension_numbers = #tpu.dot_dimension_numbers<[1], [0], [0], [1], [0, 0, 1, 1], [], []>} : vector<16x32xbf16>, vector<32x64xbf16>, vector<16x64xf32> -> vector<16x64xf32>
    %111 = vector.broadcast %108 : vector<1x64xf32> to vector<16x64xf32>
    %112 = arith.addf %110, %111 : vector<16x64xf32>
    %cst_38 = arith.constant 5.000000e-01 : f32
    %113 = vector.broadcast %cst_38 : f32 to vector<16x64xf32>
    %114 = arith.mulf %113, %112 : vector<16x64xf32>
    %cst_39 = arith.constant 4.471500e-02 : f32
    %115 = vector.broadcast %cst_39 : f32 to vector<16x64xf32>
    %116 = arith.mulf %115, %112 : vector<16x64xf32>
    %117 = arith.mulf %116, %112 : vector<16x64xf32>
    %118 = arith.mulf %117, %112 : vector<16x64xf32>
    %119 = arith.addf %112, %118 : vector<16x64xf32>
    %cst_40 = arith.constant 0.797884583 : f32
    %120 = vector.broadcast %cst_40 : f32 to vector<16x64xf32>
    %121 = arith.mulf %120, %119 : vector<16x64xf32>
    %122 = math.tanh %121 : vector<16x64xf32>
    %cst_41 = arith.constant 1.000000e+00 : f32
    %123 = vector.broadcast %cst_41 : f32 to vector<16x64xf32>
    %124 = arith.addf %123, %122 : vector<16x64xf32>
    %125 = arith.mulf %114, %124 : vector<16x64xf32>
    %c96 = arith.constant 96 : index
    %c0_42 = arith.constant 0 : index
    %126 = vector.load %arg3[%c96, %c0_42] : memref<384x128xbf16, #tpu.memory_space<vmem>>, vector<64x32xbf16>
    %c7 = arith.constant 7 : index
    %c0_43 = arith.constant 0 : index
    %127 = vector.load %arg2[%c7, %c0_43] : memref<24x128xf32, #tpu.memory_space<vmem>>, vector<1x32xf32>
    %128 = arith.truncf %125 : vector<16x64xf32> to vector<16x64xbf16>
    %cst_44 = arith.constant dense<0.000000e+00> : vector<16x32xf32>
    %129 = tpu.matmul %128, %126, %cst_44 {dimension_numbers = #tpu.dot_dimension_numbers<[1], [0], [0], [1], [0, 0, 1, 1], [], []>} : vector<16x64xbf16>, vector<64x32xbf16>, vector<16x32xf32> -> vector<16x32xf32>
    %130 = vector.broadcast %127 : vector<1x32xf32> to vector<16x32xf32>
    %131 = arith.addf %129, %130 : vector<16x32xf32>
    %132 = arith.addf %131, %106 : vector<16x32xf32>
    %c8 = arith.constant 8 : index
    %c0_45 = arith.constant 0 : index
    %133 = vector.load %arg2[%c8, %c0_45] : memref<24x128xf32, #tpu.memory_space<vmem>>, vector<1x32xf32>
    %c9 = arith.constant 9 : index
    %c0_46 = arith.constant 0 : index
    %134 = vector.load %arg2[%c9, %c0_46] : memref<24x128xf32, #tpu.memory_space<vmem>>, vector<1x32xf32>
    %cst_47 = arith.constant dense<0.000000e+00> : vector<16xf32>
    %135 = vector.multi_reduction <add>, %132, %cst_47 [1] : vector<16x32xf32> to vector<16xf32>
    %136 = vector.shape_cast %135 : vector<16xf32> to vector<16x1xf32>
    %cst_48 = arith.constant 3.200000e+01 : f32
    %137 = vector.broadcast %cst_48 : f32 to vector<16x1xf32>
    %138 = arith.divf %136, %137 : vector<16x1xf32>
    %139 = vector.broadcast %138 : vector<16x1xf32> to vector<16x32xf32>
    %140 = arith.subf %132, %139 : vector<16x32xf32>
    %141 = arith.mulf %140, %140 : vector<16x32xf32>
    %cst_49 = arith.constant dense<0.000000e+00> : vector<16xf32>
    %142 = vector.multi_reduction <add>, %141, %cst_49 [1] : vector<16x32xf32> to vector<16xf32>
    %143 = vector.shape_cast %142 : vector<16xf32> to vector<16x1xf32>
    %cst_50 = arith.constant 3.200000e+01 : f32
    %144 = vector.broadcast %cst_50 : f32 to vector<16x1xf32>
    %145 = arith.divf %143, %144 : vector<16x1xf32>
    %146 = vector.broadcast %138 : vector<16x1xf32> to vector<16x32xf32>
    %147 = arith.subf %132, %146 : vector<16x32xf32>
    %cst_51 = arith.constant 9.99999996E-13 : f32
    %148 = vector.broadcast %cst_51 : f32 to vector<16x1xf32>
    %149 = arith.addf %145, %148 : vector<16x1xf32>
    %150 = math.rsqrt %149 : vector<16x1xf32>
    %151 = vector.broadcast %150 : vector<16x1xf32> to vector<16x32xf32>
    %152 = arith.mulf %147, %151 : vector<16x32xf32>
    %153 = vector.broadcast %133 : vector<1x32xf32> to vector<16x32xf32>
    %154 = arith.mulf %152, %153 : vector<16x32xf32>
    %155 = vector.broadcast %134 : vector<1x32xf32> to vector<16x32xf32>
    %156 = arith.addf %154, %155 : vector<16x32xf32>
    %c160 = arith.constant 160 : index
    %c0_52 = arith.constant 0 : index
    %157 = vector.load %arg3[%c160, %c0_52] : memref<384x128xbf16, #tpu.memory_space<vmem>>, vector<32x96xbf16>
    %c10 = arith.constant 10 : index
    %c0_53 = arith.constant 0 : index
    %158 = vector.load %arg2[%c10, %c0_53] : memref<24x128xf32, #tpu.memory_space<vmem>>, vector<1x96xf32>
    %159 = arith.truncf %156 : vector<16x32xf32> to vector<16x32xbf16>
    %cst_54 = arith.constant dense<0.000000e+00> : vector<16x96xf32>
    %160 = tpu.matmul %159, %157, %cst_54 {dimension_numbers = #tpu.dot_dimension_numbers<[1], [0], [0], [1], [0, 0, 1, 1], [], []>} : vector<16x32xbf16>, vector<32x96xbf16>, vector<16x96xf32> -> vector<16x96xf32>
    %161 = vector.broadcast %158 : vector<1x96xf32> to vector<16x96xf32>
    %162 = arith.addf %160, %161 : vector<16x96xf32>
    %163 = arith.truncf %162 : vector<16x96xf32> to vector<16x96xbf16>
    %c192 = arith.constant 192 : index
    %c0_55 = arith.constant 0 : index
    %164 = vector.load %arg3[%c192, %c0_55] : memref<384x128xbf16, #tpu.memory_space<vmem>>, vector<32x32xbf16>
    %165 = vector.extract_strided_slice %163 {offsets = [0, 0], sizes = [16, 16], strides = [1, 1]} : vector<16x96xbf16> to vector<16x16xbf16>
    %166 = vector.extract_strided_slice %163 {offsets = [0, 32], sizes = [16, 16], strides = [1, 1]} : vector<16x96xbf16> to vector<16x16xbf16>
    %167 = vector.extract_strided_slice %163 {offsets = [0, 64], sizes = [16, 16], strides = [1, 1]} : vector<16x96xbf16> to vector<16x16xbf16>
    %cst_56 = arith.constant dense<0.000000e+00> : vector<16x16xf32>
    %168 = tpu.matmul %165, %166, %cst_56 {dimension_numbers = #tpu.dot_dimension_numbers<[1], [1], [0], [0], [0, 0, 1, 0], [], []>} : vector<16x16xbf16>, vector<16x16xbf16>, vector<16x16xf32> -> vector<16x16xf32>
    %cst_57 = arith.constant 2.500000e-01 : f32
    %169 = vector.broadcast %cst_57 : f32 to vector<16x16xf32>
    %170 = arith.mulf %168, %169 : vector<16x16xf32>
    %171 = arith.addf %170, %0 : vector<16x16xf32>
    %cst_58 = arith.constant dense<0xFF800000> : vector<16xf32>
    %172 = vector.multi_reduction <maximumf>, %171, %cst_58 [1] : vector<16x16xf32> to vector<16xf32>
    %173 = vector.shape_cast %172 : vector<16xf32> to vector<16x1xf32>
    %174 = vector.broadcast %173 : vector<16x1xf32> to vector<16x16xf32>
    %175 = arith.subf %171, %174 : vector<16x16xf32>
    %176 = math.exp %175 : vector<16x16xf32>
    %cst_59 = arith.constant dense<0.000000e+00> : vector<16xf32>
    %177 = vector.multi_reduction <add>, %176, %cst_59 [1] : vector<16x16xf32> to vector<16xf32>
    %178 = vector.shape_cast %177 : vector<16xf32> to vector<16x1xf32>
    %179 = tpu.reciprocal %178 {approx = true} : vector<16x1xf32> -> vector<16x1xf32>
    %180 = vector.broadcast %179 : vector<16x1xf32> to vector<16x16xf32>
    %181 = arith.mulf %176, %180 : vector<16x16xf32>
    %182 = arith.truncf %181 : vector<16x16xf32> to vector<16x16xbf16>
    %cst_60 = arith.constant dense<0.000000e+00> : vector<16x16xf32>
    %183 = tpu.matmul %182, %167, %cst_60 {dimension_numbers = #tpu.dot_dimension_numbers<[1], [0], [0], [1], [0, 0, 1, 1], [], []>} : vector<16x16xbf16>, vector<16x16xbf16>, vector<16x16xf32> -> vector<16x16xf32>
    %184 = arith.truncf %183 : vector<16x16xf32> to vector<16x16xbf16>
    %185 = vector.extract_strided_slice %164 {offsets = [0, 0], sizes = [16, 32], strides = [1, 1]} : vector<32x32xbf16> to vector<16x32xbf16>
    %cst_61 = arith.constant dense<0.000000e+00> : vector<16x32xf32>
    %186 = tpu.matmul %184, %185, %cst_61 {dimension_numbers = #tpu.dot_dimension_numbers<[1], [0], [0], [1], [0, 0, 1, 1], [], []>} : vector<16x16xbf16>, vector<16x32xbf16>, vector<16x32xf32> -> vector<16x32xf32>
    %187 = vector.extract_strided_slice %163 {offsets = [0, 16], sizes = [16, 16], strides = [1, 1]} : vector<16x96xbf16> to vector<16x16xbf16>
    %188 = vector.extract_strided_slice %163 {offsets = [0, 48], sizes = [16, 16], strides = [1, 1]} : vector<16x96xbf16> to vector<16x16xbf16>
    %189 = vector.extract_strided_slice %163 {offsets = [0, 80], sizes = [16, 16], strides = [1, 1]} : vector<16x96xbf16> to vector<16x16xbf16>
    %cst_62 = arith.constant dense<0.000000e+00> : vector<16x16xf32>
    %190 = tpu.matmul %187, %188, %cst_62 {dimension_numbers = #tpu.dot_dimension_numbers<[1], [1], [0], [0], [0, 0, 1, 0], [], []>} : vector<16x16xbf16>, vector<16x16xbf16>, vector<16x16xf32> -> vector<16x16xf32>
    %cst_63 = arith.constant 2.500000e-01 : f32
    %191 = vector.broadcast %cst_63 : f32 to vector<16x16xf32>
    %192 = arith.mulf %190, %191 : vector<16x16xf32>
    %193 = arith.addf %192, %0 : vector<16x16xf32>
    %cst_64 = arith.constant dense<0xFF800000> : vector<16xf32>
    %194 = vector.multi_reduction <maximumf>, %193, %cst_64 [1] : vector<16x16xf32> to vector<16xf32>
    %195 = vector.shape_cast %194 : vector<16xf32> to vector<16x1xf32>
    %196 = vector.broadcast %195 : vector<16x1xf32> to vector<16x16xf32>
    %197 = arith.subf %193, %196 : vector<16x16xf32>
    %198 = math.exp %197 : vector<16x16xf32>
    %cst_65 = arith.constant dense<0.000000e+00> : vector<16xf32>
    %199 = vector.multi_reduction <add>, %198, %cst_65 [1] : vector<16x16xf32> to vector<16xf32>
    %200 = vector.shape_cast %199 : vector<16xf32> to vector<16x1xf32>
    %201 = tpu.reciprocal %200 {approx = true} : vector<16x1xf32> -> vector<16x1xf32>
    %202 = vector.broadcast %201 : vector<16x1xf32> to vector<16x16xf32>
    %203 = arith.mulf %198, %202 : vector<16x16xf32>
    %204 = arith.truncf %203 : vector<16x16xf32> to vector<16x16xbf16>
    %cst_66 = arith.constant dense<0.000000e+00> : vector<16x16xf32>
    %205 = tpu.matmul %204, %189, %cst_66 {dimension_numbers = #tpu.dot_dimension_numbers<[1], [0], [0], [1], [0, 0, 1, 1], [], []>} : vector<16x16xbf16>, vector<16x16xbf16>, vector<16x16xf32> -> vector<16x16xf32>
    %206 = arith.truncf %205 : vector<16x16xf32> to vector<16x16xbf16>
    %207 = vector.extract_strided_slice %164 {offsets = [16, 0], sizes = [16, 32], strides = [1, 1]} : vector<32x32xbf16> to vector<16x32xbf16>
    %cst_67 = arith.constant dense<0.000000e+00> : vector<16x32xf32>
    %208 = tpu.matmul %206, %207, %cst_67 {dimension_numbers = #tpu.dot_dimension_numbers<[1], [0], [0], [1], [0, 0, 1, 1], [], []>} : vector<16x16xbf16>, vector<16x32xbf16>, vector<16x32xf32> -> vector<16x32xf32>
    %209 = arith.addf %186, %208 : vector<16x32xf32>
    %c11 = arith.constant 11 : index
    %c0_68 = arith.constant 0 : index
    %210 = vector.load %arg2[%c11, %c0_68] : memref<24x128xf32, #tpu.memory_space<vmem>>, vector<1x32xf32>
    %211 = vector.broadcast %210 : vector<1x32xf32> to vector<16x32xf32>
    %212 = arith.addf %209, %211 : vector<16x32xf32>
    %213 = arith.addf %212, %156 : vector<16x32xf32>
    %c12 = arith.constant 12 : index
    %c0_69 = arith.constant 0 : index
    %214 = vector.load %arg2[%c12, %c0_69] : memref<24x128xf32, #tpu.memory_space<vmem>>, vector<1x32xf32>
    %c13 = arith.constant 13 : index
    %c0_70 = arith.constant 0 : index
    %215 = vector.load %arg2[%c13, %c0_70] : memref<24x128xf32, #tpu.memory_space<vmem>>, vector<1x32xf32>
    %cst_71 = arith.constant dense<0.000000e+00> : vector<16xf32>
    %216 = vector.multi_reduction <add>, %213, %cst_71 [1] : vector<16x32xf32> to vector<16xf32>
    %217 = vector.shape_cast %216 : vector<16xf32> to vector<16x1xf32>
    %cst_72 = arith.constant 3.200000e+01 : f32
    %218 = vector.broadcast %cst_72 : f32 to vector<16x1xf32>
    %219 = arith.divf %217, %218 : vector<16x1xf32>
    %220 = vector.broadcast %219 : vector<16x1xf32> to vector<16x32xf32>
    %221 = arith.subf %213, %220 : vector<16x32xf32>
    %222 = arith.mulf %221, %221 : vector<16x32xf32>
    %cst_73 = arith.constant dense<0.000000e+00> : vector<16xf32>
    %223 = vector.multi_reduction <add>, %222, %cst_73 [1] : vector<16x32xf32> to vector<16xf32>
    %224 = vector.shape_cast %223 : vector<16xf32> to vector<16x1xf32>
    %cst_74 = arith.constant 3.200000e+01 : f32
    %225 = vector.broadcast %cst_74 : f32 to vector<16x1xf32>
    %226 = arith.divf %224, %225 : vector<16x1xf32>
    %227 = vector.broadcast %219 : vector<16x1xf32> to vector<16x32xf32>
    %228 = arith.subf %213, %227 : vector<16x32xf32>
    %cst_75 = arith.constant 9.99999996E-13 : f32
    %229 = vector.broadcast %cst_75 : f32 to vector<16x1xf32>
    %230 = arith.addf %226, %229 : vector<16x1xf32>
    %231 = math.rsqrt %230 : vector<16x1xf32>
    %232 = vector.broadcast %231 : vector<16x1xf32> to vector<16x32xf32>
    %233 = arith.mulf %228, %232 : vector<16x32xf32>
    %234 = vector.broadcast %214 : vector<1x32xf32> to vector<16x32xf32>
    %235 = arith.mulf %233, %234 : vector<16x32xf32>
    %236 = vector.broadcast %215 : vector<1x32xf32> to vector<16x32xf32>
    %237 = arith.addf %235, %236 : vector<16x32xf32>
    %c224 = arith.constant 224 : index
    %c0_76 = arith.constant 0 : index
    %238 = vector.load %arg3[%c224, %c0_76] : memref<384x128xbf16, #tpu.memory_space<vmem>>, vector<32x64xbf16>
    %c14 = arith.constant 14 : index
    %c0_77 = arith.constant 0 : index
    %239 = vector.load %arg2[%c14, %c0_77] : memref<24x128xf32, #tpu.memory_space<vmem>>, vector<1x64xf32>
    %240 = arith.truncf %237 : vector<16x32xf32> to vector<16x32xbf16>
    %cst_78 = arith.constant dense<0.000000e+00> : vector<16x64xf32>
    %241 = tpu.matmul %240, %238, %cst_78 {dimension_numbers = #tpu.dot_dimension_numbers<[1], [0], [0], [1], [0, 0, 1, 1], [], []>} : vector<16x32xbf16>, vector<32x64xbf16>, vector<16x64xf32> -> vector<16x64xf32>
    %242 = vector.broadcast %239 : vector<1x64xf32> to vector<16x64xf32>
    %243 = arith.addf %241, %242 : vector<16x64xf32>
    %cst_79 = arith.constant 5.000000e-01 : f32
    %244 = vector.broadcast %cst_79 : f32 to vector<16x64xf32>
    %245 = arith.mulf %244, %243 : vector<16x64xf32>
    %cst_80 = arith.constant 4.471500e-02 : f32
    %246 = vector.broadcast %cst_80 : f32 to vector<16x64xf32>
    %247 = arith.mulf %246, %243 : vector<16x64xf32>
    %248 = arith.mulf %247, %243 : vector<16x64xf32>
    %249 = arith.mulf %248, %243 : vector<16x64xf32>
    %250 = arith.addf %243, %249 : vector<16x64xf32>
    %cst_81 = arith.constant 0.797884583 : f32
    %251 = vector.broadcast %cst_81 : f32 to vector<16x64xf32>
    %252 = arith.mulf %251, %250 : vector<16x64xf32>
    %253 = math.tanh %252 : vector<16x64xf32>
    %cst_82 = arith.constant 1.000000e+00 : f32
    %254 = vector.broadcast %cst_82 : f32 to vector<16x64xf32>
    %255 = arith.addf %254, %253 : vector<16x64xf32>
    %256 = arith.mulf %245, %255 : vector<16x64xf32>
    %c256 = arith.constant 256 : index
    %c0_83 = arith.constant 0 : index
    %257 = vector.load %arg3[%c256, %c0_83] : memref<384x128xbf16, #tpu.memory_space<vmem>>, vector<64x32xbf16>
    %c15 = arith.constant 15 : index
    %c0_84 = arith.constant 0 : index
    %258 = vector.load %arg2[%c15, %c0_84] : memref<24x128xf32, #tpu.memory_space<vmem>>, vector<1x32xf32>
    %259 = arith.truncf %256 : vector<16x64xf32> to vector<16x64xbf16>
    %cst_85 = arith.constant dense<0.000000e+00> : vector<16x32xf32>
    %260 = tpu.matmul %259, %257, %cst_85 {dimension_numbers = #tpu.dot_dimension_numbers<[1], [0], [0], [1], [0, 0, 1, 1], [], []>} : vector<16x64xbf16>, vector<64x32xbf16>, vector<16x32xf32> -> vector<16x32xf32>
    %261 = vector.broadcast %258 : vector<1x32xf32> to vector<16x32xf32>
    %262 = arith.addf %260, %261 : vector<16x32xf32>
    %263 = arith.addf %262, %237 : vector<16x32xf32>
    %c16 = arith.constant 16 : index
    %c0_86 = arith.constant 0 : index
    %264 = vector.load %arg2[%c16, %c0_86] : memref<24x128xf32, #tpu.memory_space<vmem>>, vector<1x32xf32>
    %c17 = arith.constant 17 : index
    %c0_87 = arith.constant 0 : index
    %265 = vector.load %arg2[%c17, %c0_87] : memref<24x128xf32, #tpu.memory_space<vmem>>, vector<1x32xf32>
    %cst_88 = arith.constant dense<0.000000e+00> : vector<16xf32>
    %266 = vector.multi_reduction <add>, %263, %cst_88 [1] : vector<16x32xf32> to vector<16xf32>
    %267 = vector.shape_cast %266 : vector<16xf32> to vector<16x1xf32>
    %cst_89 = arith.constant 3.200000e+01 : f32
    %268 = vector.broadcast %cst_89 : f32 to vector<16x1xf32>
    %269 = arith.divf %267, %268 : vector<16x1xf32>
    %270 = vector.broadcast %269 : vector<16x1xf32> to vector<16x32xf32>
    %271 = arith.subf %263, %270 : vector<16x32xf32>
    %272 = arith.mulf %271, %271 : vector<16x32xf32>
    %cst_90 = arith.constant dense<0.000000e+00> : vector<16xf32>
    %273 = vector.multi_reduction <add>, %272, %cst_90 [1] : vector<16x32xf32> to vector<16xf32>
    %274 = vector.shape_cast %273 : vector<16xf32> to vector<16x1xf32>
    %cst_91 = arith.constant 3.200000e+01 : f32
    %275 = vector.broadcast %cst_91 : f32 to vector<16x1xf32>
    %276 = arith.divf %274, %275 : vector<16x1xf32>
    %277 = vector.broadcast %269 : vector<16x1xf32> to vector<16x32xf32>
    %278 = arith.subf %263, %277 : vector<16x32xf32>
    %cst_92 = arith.constant 9.99999996E-13 : f32
    %279 = vector.broadcast %cst_92 : f32 to vector<16x1xf32>
    %280 = arith.addf %276, %279 : vector<16x1xf32>
    %281 = math.rsqrt %280 : vector<16x1xf32>
    %282 = vector.broadcast %281 : vector<16x1xf32> to vector<16x32xf32>
    %283 = arith.mulf %278, %282 : vector<16x32xf32>
    %284 = vector.broadcast %264 : vector<1x32xf32> to vector<16x32xf32>
    %285 = arith.mulf %283, %284 : vector<16x32xf32>
    %286 = vector.broadcast %265 : vector<1x32xf32> to vector<16x32xf32>
    %287 = arith.addf %285, %286 : vector<16x32xf32>
    %c320 = arith.constant 320 : index
    %c0_93 = arith.constant 0 : index
    %288 = vector.load %arg3[%c320, %c0_93] : memref<384x128xbf16, #tpu.memory_space<vmem>>, vector<32x32xbf16>
    %c18 = arith.constant 18 : index
    %c0_94 = arith.constant 0 : index
    %289 = vector.load %arg2[%c18, %c0_94] : memref<24x128xf32, #tpu.memory_space<vmem>>, vector<1x32xf32>
    %290 = arith.truncf %287 : vector<16x32xf32> to vector<16x32xbf16>
    %cst_95 = arith.constant dense<0.000000e+00> : vector<16x32xf32>
    %291 = tpu.matmul %290, %288, %cst_95 {dimension_numbers = #tpu.dot_dimension_numbers<[1], [0], [0], [1], [0, 0, 1, 1], [], []>} : vector<16x32xbf16>, vector<32x32xbf16>, vector<16x32xf32> -> vector<16x32xf32>
    %292 = vector.broadcast %289 : vector<1x32xf32> to vector<16x32xf32>
    %293 = arith.addf %291, %292 : vector<16x32xf32>
    %cst_96 = arith.constant 5.000000e-01 : f32
    %294 = vector.broadcast %cst_96 : f32 to vector<16x32xf32>
    %295 = arith.mulf %294, %293 : vector<16x32xf32>
    %cst_97 = arith.constant 4.471500e-02 : f32
    %296 = vector.broadcast %cst_97 : f32 to vector<16x32xf32>
    %297 = arith.mulf %296, %293 : vector<16x32xf32>
    %298 = arith.mulf %297, %293 : vector<16x32xf32>
    %299 = arith.mulf %298, %293 : vector<16x32xf32>
    %300 = arith.addf %293, %299 : vector<16x32xf32>
    %cst_98 = arith.constant 0.797884583 : f32
    %301 = vector.broadcast %cst_98 : f32 to vector<16x32xf32>
    %302 = arith.mulf %301, %300 : vector<16x32xf32>
    %303 = math.tanh %302 : vector<16x32xf32>
    %cst_99 = arith.constant 1.000000e+00 : f32
    %304 = vector.broadcast %cst_99 : f32 to vector<16x32xf32>
    %305 = arith.addf %304, %303 : vector<16x32xf32>
    %306 = arith.mulf %295, %305 : vector<16x32xf32>
    %c19 = arith.constant 19 : index
    %c0_100 = arith.constant 0 : index
    %307 = vector.load %arg2[%c19, %c0_100] : memref<24x128xf32, #tpu.memory_space<vmem>>, vector<1x32xf32>
    %c20 = arith.constant 20 : index
    %c0_101 = arith.constant 0 : index
    %308 = vector.load %arg2[%c20, %c0_101] : memref<24x128xf32, #tpu.memory_space<vmem>>, vector<1x32xf32>
    %cst_102 = arith.constant dense<0.000000e+00> : vector<16xf32>
    %309 = vector.multi_reduction <add>, %306, %cst_102 [1] : vector<16x32xf32> to vector<16xf32>
    %310 = vector.shape_cast %309 : vector<16xf32> to vector<16x1xf32>
    %cst_103 = arith.constant 3.200000e+01 : f32
    %311 = vector.broadcast %cst_103 : f32 to vector<16x1xf32>
    %312 = arith.divf %310, %311 : vector<16x1xf32>
    %313 = vector.broadcast %312 : vector<16x1xf32> to vector<16x32xf32>
    %314 = arith.subf %306, %313 : vector<16x32xf32>
    %315 = arith.mulf %314, %314 : vector<16x32xf32>
    %cst_104 = arith.constant dense<0.000000e+00> : vector<16xf32>
    %316 = vector.multi_reduction <add>, %315, %cst_104 [1] : vector<16x32xf32> to vector<16xf32>
    %317 = vector.shape_cast %316 : vector<16xf32> to vector<16x1xf32>
    %cst_105 = arith.constant 3.200000e+01 : f32
    %318 = vector.broadcast %cst_105 : f32 to vector<16x1xf32>
    %319 = arith.divf %317, %318 : vector<16x1xf32>
    %320 = vector.broadcast %312 : vector<16x1xf32> to vector<16x32xf32>
    %321 = arith.subf %306, %320 : vector<16x32xf32>
    %cst_106 = arith.constant 9.99999996E-13 : f32
    %322 = vector.broadcast %cst_106 : f32 to vector<16x1xf32>
    %323 = arith.addf %319, %322 : vector<16x1xf32>
    %324 = math.rsqrt %323 : vector<16x1xf32>
    %325 = vector.broadcast %324 : vector<16x1xf32> to vector<16x32xf32>
    %326 = arith.mulf %321, %325 : vector<16x32xf32>
    %327 = vector.broadcast %307 : vector<1x32xf32> to vector<16x32xf32>
    %328 = arith.mulf %326, %327 : vector<16x32xf32>
    %329 = vector.broadcast %308 : vector<1x32xf32> to vector<16x32xf32>
    %330 = arith.addf %328, %329 : vector<16x32xf32>
    %c352 = arith.constant 352 : index
    %c0_107 = arith.constant 0 : index
    %331 = vector.load %arg3[%c352, %c0_107] : memref<384x128xbf16, #tpu.memory_space<vmem>>, vector<32x128xbf16>
    %c21 = arith.constant 21 : index
    %c0_108 = arith.constant 0 : index
    %332 = vector.load %arg2[%c21, %c0_108] : memref<24x128xf32, #tpu.memory_space<vmem>>, vector<1x128xf32>
    %333 = arith.truncf %330 : vector<16x32xf32> to vector<16x32xbf16>
    %cst_109 = arith.constant dense<0.000000e+00> : vector<16x128xf32>
    %334 = tpu.matmul %333, %331, %cst_109 {dimension_numbers = #tpu.dot_dimension_numbers<[1], [0], [0], [1], [0, 0, 1, 1], [], []>} : vector<16x32xbf16>, vector<32x128xbf16>, vector<16x128xf32> -> vector<16x128xf32>
    %335 = vector.broadcast %332 : vector<1x128xf32> to vector<16x128xf32>
    %336 = arith.addf %334, %335 : vector<16x128xf32>
    %c0_110 = arith.constant 0 : index
    %c0_111 = arith.constant 0 : index
    %337 = vector.load %arg4[%c0_110, %c0_111] : memref<16x128xf32, #tpu.memory_space<vmem>>, vector<16x128xf32>
    tpu.vector_store %arg4[%c0_110, %c0_111], %336 {strides = array<i32>} : memref<16x128xf32, #tpu.memory_space<vmem>>, vector<16x128xf32>,
    return
  }
}

</mosaic_0001>

<bundles_post_ra>
// kernel: bert_mlm_forward.1
= control target key start
LH: loop header
LB: loop body
LE: loop exit
PB: predicated region body
PF: predicated region fallthrough
CT: control target
= control target key end

     0   :  { %vm25_vm0 = vcmask 261120   ;;  %s2397_s0 = inlined_call_operand.vmem [shape: f32[16,32], index: 0, kind: input, shape index: {}]   ;;  %s2398_s1 = inlined_call_operand.vmem [shape: f32[16,16], index: 1, kind: input, shape index: {}]   ;;  %s2399_s2 = inlined_call_operand.vmem [shape: f32[24,128], index: 2, kind: input, shape index: {}]   ;;  %s2400_s3 = inlined_call_operand.vmem [shape: bf16[384,128], index: 3, kind: input, shape index: {}]   ;;  %s2401_s4 = inlined_call_operand.hbm [shape: f32[16,128], index: 4, kind: output, shape index: {}]  }
   0x1   :  { %v21_v0 = vld [vmem:[%s2397_s0] sm:$0xff]  ;;  %v22_v1 = vld [vmem:[%s2397_s0 + $0x8] sm:$0xff] }
   0x2   :  { %v26_v2 = vsel %vm25_vm0, %v21_v0, 0.0  ;;  %v29_v3 = vsel %vm25_vm0, %v22_v1, 0.0 }
   0x3   :  { %27 = vadd.xlane.f32.xlu0 %v26_v2 }
   0x7   :  { %30 = vadd.xlane.f32.xlu0 %v29_v3 }
   0x8   :  { %9 = vsyncpa [#allocation3], 0  ;;  %v1905_v14 = vld [vmem:[%s2400_s3 + $0x8] sm:$0xff]   ;;  %v2019_v15 = vmov 0.0   ;;  %vm2020_vm1 = vmmov 0   ;;  %v1906_v16 = vld [vmem:[%s2400_s3] sm:$0xff]  }
   0x9   :  { %1751 = vmatprep.subr.bf16.mxu0 %v2019_v15  ;;  %1755 = vmatprep.mubr.msk.bf16.mxu0 %vm2020_vm1, %v2019_v15  ;;  %v1633_v25 = vld [vmem:[%s2399_s2] ss:$0 sm:$0xff]  ;;  %v1634_v29 = vld [vmem:[%s2399_s2 + $0x1] ss:$0 sm:$0xff]  ;;  %v1635_v35 = vld [vmem:[%s2399_s2 + $0x2] ss:$0 sm:$0xff] }
   0xa   :  { %1752 = vmatpush3.bf16.msra.mxu0 %v1905_v14  ;;  %1759 = vmatprep.subr.bf16.mxu1 %v2019_v15  ;;  %s2021_s28 = smov 80   ;;  %s2022_s29 = smov 96   ;;  %vm139_vm2 = vcmask 130048   ;;  %v2118_v48 = vld [vmem:[%s2398_s1] sm:$0xff]  ;;  %v2124_v53 = vld [vmem:[%s2398_s1 + $0x8] sm:$0xff]  ;;  %vm659_vm3 = vcmask 523264  }
   0xb   :  { %1753 = vmatprep.subr.bf16.mxu0 %v2019_v15  ;;  %1761 = vmatprep.mubr.msk.bf16.mxu1 %vm2020_vm1, %v2019_v15  ;;  %s2023_s30 = smov 112   ;;  %s2024_s1 = smov 64  }
   0xc   :  { %s2025_s9 = smov 48   ;;  %s2026_s12 = smov [#allocation2]  }
   0xd   :  { %s1622_s13 = sshll.u32 %s2026_s12, 4  ;;  %s1623_s13 = int_to_ptr.vmem [resolvable:$true] %s1622_s13 }
   0xe   :  { %1754 = vmatpush3.bf16.msra.mxu0 %v1906_v16  ;;  %s1997_s14 = scalar_lea.vmem %s1623_s13, 256  ;;  %p2002_p1 = scmp.lt.s32.totalorder %s1623_s13, %s1623_s13 }
   0xf   :  { %1765 = vmatprep.subr.bf16.mxu0 %v2019_v15  ;;  %p1998_p0 = scmp.ne.s32.totalorder %s1623_s13, %s1997_s14  ;;  %p2003_p2 = scmp.lt.s32.totalorder %s1997_s14, %s1997_s14 }
  0x11   :  { %p2004_p3 = por %p2003_p2, %p2002_p1 }
  0x13   :  { %p2005_p4 = pnand %p2004_p3, %p1998_p0 }
  0x8c   :  { %v28_v4 = vpop.xlane.xlu0 %27 }
  0x8d   :  { %v33_v5 = vmul.f32 0.03125, %v28_v4 }
  0x8f   :  { %v35_v6 = vsub.f32 %v21_v0, %v33_v5 }
  0x90   :  { %v31_v7 = vpop.xlane.xlu0 %30 }
  0x91   :  { %v34_v8 = vmul.f32 0.03125, %v31_v7  ;;  %v37_v9 = vmul.f32 %v35_v6, %v35_v6 }
  0x93   :  { %v36_v10 = vsub.f32 %v22_v1, %v34_v8  ;;  %v39_v11 = vsel %vm25_vm0, %v37_v9, 0.0 }
  0x94   :  { %40 = vadd.xlane.f32.xlu1 %v39_v11 }
  0x95   :  { %v38_v12 = vmul.f32 %v36_v10, %v36_v10 }
  0x97   :  { %v42_v13 = vsel %vm25_vm0, %v38_v12, 0.0 }
  0x98   :  { %43 = vadd.xlane.f32.xlu1 %v42_v13 }
 0x11d   :  { %v41_v17 = vpop.xlane.xlu1 %40 }
 0x11e   :  { %v45_v18 = vmul.f32 0.03125, %v41_v17 }
 0x120   :  { %v47_v19 = vadd.f32 1e-12, %v45_v18 }
 0x121   :  { %v44_v20 = vpop.xlane.xlu1 %43 }
 0x122   :  { %1929 = vrsqrt.f32 %v47_v19  ;;  %v46_v21 = vmul.f32 0.03125, %v44_v20 }
 0x124   :  { %v48_v22 = vadd.f32 1e-12, %v46_v21 }
 0x126   :  { %1931 = vrsqrt.f32 %v48_v22 }
 0x12f   :  { %v1930_v23 = vpop.eup %1929 }
 0x130   :  { %v51_v24 = vmul.f32 %v1930_v23, %v35_v6 }
 0x132   :  { %v57_v28 = vmul.f32 %v1633_v25, %v51_v24 }
 0x133   :  { %v1932_v26 = vpop.eup %1931 }
 0x134   :  { %v52_v27 = vmul.f32 %v1932_v26, %v36_v10  ;;  %v2084_v31 = vadd.f32 %v1634_v29, %v57_v28 }
 0x136   :  { %v58_v30 = vmul.f32 %v1633_v25, %v52_v27 }
 0x138   :  { %v2086_v32 = vadd.f32 %v1634_v29, %v58_v30 }
 0x13a   :  { %v70_v33 = vpack.c.bf16 %v2086_v32, %v2084_v31 }
 0x13c   :  { %1756 = vmatmul.mubr.msk.bf16.vlgmr.msra.gmra.mxu0 %vm25_vm0, %v70_v33 }
 0x13d   :  { %1767 = vmatprep.mubr.msk.bf16.mxu0 %vm2020_vm1, %v2019_v15 }
 0x1fc   :  { %v124_v34 = vpop.f32.mrf.mxu0 }
 0x1fd   :  { %v125_v38 = vadd.f32 %v1635_v35, %v124_v34 }
 0x1fe   :  { %v1757_v36 = vpop.f32.mrf.mxu0 }
 0x200   :  { %v127_v37 = vpop.f32.mrf.mxu0 }
 0x201   :  { %v128_v39 = vadd.f32 %v1635_v35, %v127_v37 }
 0x202   :  { %v1758_v40 = vpop.f32.mrf.mxu0 }
 0x203   :  { %v2096_v41 = vpack.c.bf16 %v128_v39, %v125_v38 }
 0x205   :  { %264 = vrot.lane.b32.xlu1 %v2096_v41, %s2021_s28  ;;  %137 = vrot.lane.b32.xlu0 %v2096_v41, %s2022_s29 }
 0x209   :  { %262 = vrot.lane.b32.xlu1 %v2096_v41, %s2023_s30 }
 0x277   :  { %v138_v42 = vpop.permute.xlu0 %137  ;;  %v265_v44 = vpop.permute.xlu1 %264 }
 0x278   :  { %v144_v43 = vsel %vm139_vm2, %v138_v42, 0  ;;  %v270_v45 = vsel %vm139_vm2, %v265_v44, 0  ;;  %v1907_v44 = vld [vmem:[%s2400_s3 + $0x10] sm:$0xff]  }
 0x279   :  { %1760 = vmatpush3.bf16.xpose.msra.mxu1 %v144_v43 }
 0x27a   :  { %1771 = vmatprep.subr.bf16.mxu1 %v2019_v15 }
 0x27b   :  { %v263_v46 = vpop.permute.xlu1 %262 }
 0x280   :  { %1762 = vmatmul.mubr.msk.bf16.vlgmr.msra.gmra.mxu1 %vm139_vm2, %v2096_v41 }
 0x281   :  { %1772 = vmatpush3.bf16.xpose.msra.mxu1 %v270_v45  ;;  %1773 = vmatprep.mubr.msk.bf16.mxu1 %vm2020_vm1, %v2019_v15  ;;  %v1908_v45 = vld [vmem:[%s2400_s3 + $0x18] sm:$0xff]  }
 0x282   :  { %1783 = vmatprep.subr.bf16.mxu1 %v2019_v15 }
 0x288   :  { %1774 = vmatmul.mubr.msk.bf16.vlgmr.msra.gmra.mxu1 %vm139_vm2, %v263_v46 }
 0x289   :  { %1785 = vmatprep.mubr.msk.bf16.mxu1 %vm2020_vm1, %v2019_v15  ;;  %1784 = vmatpush3.bf16.msra.mxu1 %v1908_v45  ;;  %v1650_v45 = vld [vmem:[%s2399_s2 + $0x6] ss:$0 sm:$0xff] }
 0x28a   :  { %1795 = vmatprep.subr.bf16.mxu1 %v2019_v15 }
 0x340   :  { %v180_v47 = vpop.f32.mrf.mxu1 }
 0x341   :  { %v187_v49 = vmul.f32 0.25, %v180_v47 }
 0x342   :  { %v1763_v50 = vpop.f32.mrf.mxu1 }
 0x343   :  { %v189_v51 = vadd.f32 %v187_v49, %v2118_v48 }
 0x344   :  { %v183_v52 = vpop.f32.mrf.mxu1 }
 0x345   :  { %v188_v54 = vmul.f32 0.25, %v183_v52  ;;  %v191_v55 = vsel %vm139_vm2, %v189_v51, -inf }
 0x346   :  { %v1764_v56 = vpop.f32.mrf.mxu1  ;;  %192 = vmax.xlane.f32.xlu1 %v191_v55 }
 0x347   :  { %v190_v57 = vadd.f32 %v188_v54, %v2124_v53 }
 0x348   :  { %v306_v58 = vpop.f32.mrf.mxu1 }
 0x349   :  { %v313_v59 = vmul.f32 0.25, %v306_v58  ;;  %v194_v60 = vsel %vm139_vm2, %v190_v57, -inf }
 0x34a   :  { %v1775_v61 = vpop.f32.mrf.mxu1  ;;  %195 = vmax.xlane.f32.xlu0 %v194_v60 }
 0x34b   :  { %v315_v62 = vadd.f32 %v313_v59, %v2118_v48 }
 0x34c   :  { %v309_v63 = vpop.f32.mrf.mxu1 }
 0x34d   :  { %v314_v0 = vmul.f32 0.25, %v309_v63  ;;  %v317_v1 = vsel %vm139_vm2, %v315_v62, -inf  ;;  %v1647_v63 = vld [vmem:[%s2399_s2 + $0x3] ss:$0 sm:$0xff] }
 0x34e   :  { %v1776_v2 = vpop.f32.mrf.mxu1  ;;  %318 = vmax.xlane.f32.xlu0 %v317_v1 }
 0x34f   :  { %v316_v3 = vadd.f32 %v314_v0, %v2124_v53 }
 0x351   :  { %v320_v4 = vsel %vm139_vm2, %v316_v3, -inf }
 0x352   :  { %321 = vmax.xlane.f32.xlu0 %v320_v4 }
 0x3cf   :  { %v193_v5 = vpop.xlane.xlu1 %192 }
 0x3d0   :  { %v197_v6 = vsub.f32 %v189_v51, %v193_v5 }
 0x3d2   :  { %v199_v7 = vmul.f32 1.442695, %v197_v6 }
 0x3d3   :  { %v196_v8 = vpop.xlane.xlu0 %195 }
 0x3d4   :  { %1933 = vpow2.f32 %v199_v7  ;;  %v198_v9 = vsub.f32 %v190_v57, %v196_v8 }
 0x3d6   :  { %v201_v10 = vmul.f32 1.442695, %v198_v9 }
 0x3d7   :  { %v319_v11 = vpop.xlane.xlu0 %318 }
 0x3d8   :  { %1935 = vpow2.f32 %v201_v10  ;;  %v323_v12 = vsub.f32 %v315_v62, %v319_v11 }
 0x3da   :  { %v325_v13 = vmul.f32 1.442695, %v323_v12 }
 0x3db   :  { %v322_v14 = vpop.xlane.xlu0 %321 }
 0x3dc   :  { %1937 = vpow2.f32 %v325_v13  ;;  %v324_v16 = vsub.f32 %v316_v3, %v322_v14 }
 0x3de   :  { %v327_v17 = vmul.f32 1.442695, %v324_v16 }
 0x3e0   :  { %1939 = vpow2.f32 %v327_v17 }
 0x3e1   :  { %v1934_v18 = vpop.eup %1933 }
 0x3e2   :  { %v203_v19 = vsel %vm139_vm2, %v1934_v18, 0.0 }
 0x3e3   :  { %204 = vadd.xlane.f32.xlu1 %v203_v19 }
 0x3e5   :  { %v1936_v20 = vpop.eup %1935 }
 0x3e6   :  { %v206_v21 = vsel %vm139_vm2, %v1936_v20, 0.0 }
 0x3e7   :  { %207 = vadd.xlane.f32.xlu0 %v206_v21  ;;  %v1910_v21 = vld [vmem:[%s2400_s3 + $0x20] sm:$0xff]  }
 0x3e9   :  { %v1938_v22 = vpop.eup %1937 }
 0x3ea   :  { %v329_v23 = vsel %vm139_vm2, %v1938_v22, 0.0 }
 0x3eb   :  { %330 = vadd.xlane.f32.xlu1 %v329_v23 }
 0x3ed   :  { %v1940_v24 = vpop.eup %1939 }
 0x3ee   :  { %v332_v25 = vsel %vm139_vm2, %v1940_v24, 0.0 }
 0x3ef   :  { %333 = vadd.xlane.f32.xlu0 %v332_v25 }
 0x3fc   :  { %214 = vrot.lane.b32.xlu1 %v2096_v41, %s2024_s1 }
 0x405   :  { %340 = vrot.lane.b32.xlu0 %v2096_v41, %s2025_s9 }
 0x46c   :  { %v205_v26 = vpop.xlane.xlu1 %204 }
 0x46d   :  { %1941 = vrcp.f32 %v205_v26 }
 0x470   :  { %v208_v27 = vpop.xlane.xlu0 %207 }
 0x471   :  { %1943 = vrcp.f32 %v208_v27 }
 0x474   :  { %v331_v28 = vpop.xlane.xlu1 %330 }
 0x475   :  { %1945 = vrcp.f32 %v331_v28 }
 0x478   :  { %v334_v29 = vpop.xlane.xlu0 %333  ;;  %v215_v30 = vpop.permute.xlu1 %214 }
 0x479   :  { %1947 = vrcp.f32 %v334_v29  ;;  %1766 = vmatpush3.bf16.msra.mxu0 %v215_v30  ;;  %v1648_v30 = vld [vmem:[%s2399_s2 + $0x4] ss:$0 sm:$0xff] }
 0x47a   :  { %1777 = vmatprep.subr.bf16.mxu0 %v2019_v15  ;;  %v1942_v33 = vpop.eup %1941 }
 0x47b   :  { %v211_v35 = vmul.f32 %v1942_v33, %v1934_v18 }
 0x47c   :  { %v341_v38 = vpop.permute.xlu0 %340 }
 0x47e   :  { %v1944_v34 = vpop.eup %1943 }
 0x47f   :  { %v212_v36 = vmul.f32 %v1944_v34, %v1936_v20 }
 0x481   :  { %v213_v37 = vpack.c.bf16 %v212_v36, %v211_v35  ;;  %v1649_v36 = vld [vmem:[%s2399_s2 + $0x5] ss:$0 sm:$0xff] }
 0x482   :  { %v1946_v39 = vpop.eup %1945 }
 0x483   :  { %1768 = vmatmul.mubr.msk.bf16.vlgmr.msra.gmra.mxu0 %vm139_vm2, %v213_v37  ;;  %v337_v41 = vmul.f32 %v1946_v39, %v1938_v22 }
 0x484   :  { %1778 = vmatpush3.bf16.msra.mxu0 %v341_v38  ;;  %1779 = vmatprep.mubr.msk.bf16.mxu0 %vm2020_vm1, %v2019_v15 }
 0x485   :  { %1789 = vmatprep.subr.bf16.mxu0 %v2019_v15 }
 0x486   :  { %v1948_v40 = vpop.eup %1947 }
 0x487   :  { %v338_v42 = vmul.f32 %v1948_v40, %v1940_v24 }
 0x489   :  { %v339_v43 = vpack.c.bf16 %v338_v42, %v337_v41  ;;  %v1911_v41 = vld [vmem:[%s2400_s3 + $0x48] sm:$0xff]   ;;  %v1912_v42 = vld [vmem:[%s2400_s3 + $0x40] sm:$0xff]  }
 0x48b   :  { %1780 = vmatmul.mubr.msk.bf16.vlgmr.msra.gmra.mxu0 %vm139_vm2, %v339_v43  ;;  %v1913_v43 = vld [vmem:[%s2400_s3 + $0x38] sm:$0xff]  }
 0x48c   :  { %1791 = vmatprep.mubr.msk.bf16.mxu0 %vm2020_vm1, %v2019_v15  ;;  %1790 = vmatpush3.bf16.msra.mxu0 %v1907_v44  ;;  %v1914_v44 = vld [vmem:[%s2400_s3 + $0x30] sm:$0xff]  }
 0x48d   :  { %1803 = vmatprep.subr.bf16.mxu0 %v2019_v15 }
 0x543   :  { %v254_v46 = vpop.f32.mrf.mxu0 }
 0x545   :  { %v1769_v47 = vpop.f32.mrf.mxu0 }
 0x547   :  { %v257_v49 = vpop.f32.mrf.mxu0 }
 0x548   :  { %v261_v50 = vpack.c.bf16 %v257_v49, %v254_v46 }
 0x549   :  { %v1770_v51 = vpop.f32.mrf.mxu0 }
 0x54a   :  { %1792 = vmatmul.mubr.msk.bf16.vlgmr.msra.gmra.mxu0 %vm139_vm2, %v261_v50 }
 0x54b   :  { %v380_v52 = vpop.f32.mrf.mxu0  ;;  %1811 = vmatprep.mubr.msk.bf16.mxu0 %vm2020_vm1, %v2019_v15  ;;  %1804 = vmatpush3.bf16.msra.mxu0 %v1911_v41  ;;  %v1660_v41 = vld [vmem:[%s2399_s2 + $0x8] ss:$0 sm:$0xff] }
 0x54c   :  { %1805 = vmatprep.subr.bf16.mxu0 %v2019_v15 }
 0x54d   :  { %v1781_v54 = vpop.f32.mrf.mxu0 }
 0x54f   :  { %v383_v55 = vpop.f32.mrf.mxu0  ;;  %1806 = vmatpush3.bf16.msra.mxu0 %v1912_v42 }
 0x550   :  { %v387_v56 = vpack.c.bf16 %v383_v55, %v380_v52  ;;  %1807 = vmatprep.subr.bf16.mxu0 %v2019_v15 }
 0x551   :  { %v1782_v57 = vpop.f32.mrf.mxu0 }
 0x552   :  { %1786 = vmatmul.mubr.msk.bf16.vlgmr.msra.gmra.mxu1 %vm139_vm2, %v387_v56 }
 0x553   :  { %1799 = vmatprep.mubr.msk.bf16.mxu1 %vm2020_vm1, %v2019_v15  ;;  %1808 = vmatpush3.bf16.msra.mxu0 %v1913_v43 }
 0x554   :  { %1809 = vmatprep.subr.bf16.mxu0 %v2019_v15 }
 0x557   :  { %1810 = vmatpush3.bf16.msra.mxu0 %v1914_v44 }
 0x558   :  { %1829 = vmatprep.subr.bf16.mxu0 %v2019_v15 }
 0x60a   :  { %v481_v58 = vpop.f32.mrf.mxu0 }
 0x60c   :  { %v1793_v59 = vpop.f32.mrf.mxu0 }
 0x60e   :  { %v484_v60 = vpop.f32.mrf.mxu0 }
 0x610   :  { %v1794_v61 = vpop.f32.mrf.mxu0 }
 0x612   :  { %v431_v62 = vpop.f32.mrf.mxu1 }
 0x613   :  { %v482_v0 = vadd.f32 %v481_v58, %v431_v62 }
 0x614   :  { %v1787_v1 = vpop.f32.mrf.mxu1 }
 0x615   :  { %v493_v2 = vadd.f32 %v1647_v63, %v482_v0 }
 0x616   :  { %v434_v3 = vpop.f32.mrf.mxu1 }
 0x617   :  { %v485_v4 = vadd.f32 %v484_v60, %v434_v3  ;;  %v495_v5 = vadd.f32 %v493_v2, %v2084_v31 }
 0x618   :  { %v1788_v6 = vpop.f32.mrf.mxu1 }
 0x619   :  { %v494_v7 = vadd.f32 %v1647_v63, %v485_v4  ;;  %v499_v8 = vsel %vm25_vm0, %v495_v5, 0.0 }
 0x61a   :  { %500 = vadd.xlane.f32.xlu1 %v499_v8 }
 0x61b   :  { %v496_v9 = vadd.f32 %v494_v7, %v2086_v32  ;;  %v1909_v32 = vld [vmem:[%s2400_s3 + $0x28] sm:$0xff]  }
 0x61c   :  { %1796 = vmatpush3.bf16.msra.mxu1 %v1909_v32 }
 0x61d   :  { %v502_v10 = vsel %vm25_vm0, %v496_v9, 0.0  ;;  %1797 = vmatprep.subr.bf16.mxu1 %v2019_v15 }
 0x61e   :  { %503 = vadd.xlane.f32.xlu0 %v502_v10 }
 0x620   :  { %1798 = vmatpush3.bf16.msra.mxu1 %v1910_v21 }
 0x621   :  { %1815 = vmatprep.subr.bf16.mxu1 %v2019_v15 }
 0x6a3   :  { %v501_v11 = vpop.xlane.xlu1 %500 }
 0x6a4   :  { %v505_v12 = vmul.f32 0.03125, %v501_v11 }
 0x6a6   :  { %v507_v13 = vsub.f32 %v495_v5, %v505_v12 }
 0x6a7   :  { %v504_v14 = vpop.xlane.xlu0 %503 }
 0x6a8   :  { %v506_v16 = vmul.f32 0.03125, %v504_v14  ;;  %v509_v17 = vmul.f32 %v507_v13, %v507_v13 }
 0x6aa   :  { %v508_v18 = vsub.f32 %v496_v9, %v506_v16  ;;  %v511_v19 = vsel %vm25_vm0, %v509_v17, 0.0  ;;  %v1654_v9 = vld [vmem:[%s2399_s2 + $0x7] ss:$0 sm:$0xff] }
 0x6ab   :  { %512 = vadd.xlane.f32.xlu1 %v511_v19 }
 0x6ac   :  { %v510_v31 = vmul.f32 %v508_v18, %v508_v18 }
 0x6ae   :  { %v514_v20 = vsel %vm25_vm0, %v510_v31, 0.0 }
 0x6af   :  { %515 = vadd.xlane.f32.xlu0 %v514_v20 }
 0x734   :  { %v513_v22 = vpop.xlane.xlu1 %512 }
 0x735   :  { %v517_v23 = vmul.f32 0.03125, %v513_v22 }
 0x737   :  { %v519_v24 = vadd.f32 1e-12, %v517_v23 }
 0x738   :  { %v516_v25 = vpop.xlane.xlu0 %515 }
 0x739   :  { %1949 = vrsqrt.f32 %v519_v24  ;;  %v518_v26 = vmul.f32 0.03125, %v516_v25 }
 0x73b   :  { %v520_v27 = vadd.f32 1e-12, %v518_v26 }
 0x73d   :  { %1951 = vrsqrt.f32 %v520_v27 }
 0x746   :  { %v1950_v28 = vpop.eup %1949 }
 0x747   :  { %v523_v29 = vmul.f32 %v1950_v28, %v507_v13 }
 0x749   :  { %v529_v35 = vmul.f32 %v1648_v30, %v523_v29  ;;  %v1915_v29 = vld [vmem:[%s2400_s3 + $0x58] sm:$0xff]  }
 0x74a   :  { %v1952_v33 = vpop.eup %1951 }
 0x74b   :  { %v524_v34 = vmul.f32 %v1952_v33, %v508_v18  ;;  %v535_v38 = vadd.f32 %v1649_v36, %v529_v35 }
 0x74d   :  { %v530_v37 = vmul.f32 %v1648_v30, %v524_v34  ;;  %v1916_v30 = vld [vmem:[%s2400_s3 + $0x50] sm:$0xff]  }
 0x74f   :  { %v536_v39 = vadd.f32 %v1649_v36, %v530_v37 }
 0x751   :  { %v542_v40 = vpack.c.bf16 %v536_v39, %v535_v38 }
 0x753   :  { %1800 = vmatmul.mubr.msk.bf16.vlgmr.msra.gmra.mxu1 %vm25_vm0, %v542_v40 }
 0x754   :  { %1819 = vmatprep.mubr.msk.bf16.mxu1 %vm2020_vm1, %v2019_v15  ;;  %1816 = vmatpush3.bf16.msra.mxu1 %v1915_v29 }
 0x755   :  { %1817 = vmatprep.subr.bf16.mxu1 %v2019_v15 }
 0x758   :  { %1818 = vmatpush3.bf16.msra.mxu1 %v1916_v30 }
 0x759   :  { %1823 = vmatprep.subr.bf16.mxu1 %v2019_v15 }
 0x813   :  { %v596_v46 = vpop.f32.mrf.mxu1 }
 0x814   :  { %v597_v47 = vadd.f32 %v1650_v45, %v596_v46 }
 0x815   :  { %v1801_v49 = vpop.f32.mrf.mxu1 }
 0x816   :  { %v605_v50 = vmul.f32 0.044715, %v597_v47  ;;  %v603_v3 = vmul.f32 0.5, %v597_v47 }
 0x817   :  { %v599_v51 = vpop.f32.mrf.mxu1 }
 0x818   :  { %v607_v52 = vmul.f32 %v605_v50, %v597_v47  ;;  %v600_v54 = vadd.f32 %v1650_v45, %v599_v51  ;;  %v1661_v45 = vld [vmem:[%s2399_s2 + $0x9] ss:$0 sm:$0xff] }
 0x819   :  { %v1802_v55 = vpop.f32.mrf.mxu1 }
 0x81a   :  { %v609_v56 = vmul.f32 %v607_v52, %v597_v47  ;;  %v606_v57 = vmul.f32 0.044715, %v600_v54  ;;  %v604_v4 = vmul.f32 0.5, %v600_v54  ;;  %v1662_v52 = vld [vmem:[%s2399_s2 + $0xa] ss:$0 sm:$0xff] }
 0x81c   :  { %v611_v58 = vadd.f32 %v609_v56, %v597_v47  ;;  %v608_v59 = vmul.f32 %v606_v57, %v600_v54 }
 0x81e   :  { %v613_v60 = vmul.f32 0.7978846, %v611_v58  ;;  %v610_v61 = vmul.f32 %v608_v59, %v600_v54 }
 0x820   :  { %1953 = vtanh.f32 %v613_v60  ;;  %v612_v62 = vadd.f32 %v610_v61, %v600_v54 }
 0x822   :  { %v614_v63 = vmul.f32 0.7978846, %v612_v62 }
 0x824   :  { %1955 = vtanh.f32 %v614_v63 }
 0x82d   :  { %v1954_v0 = vpop.eup %1953 }
 0x82e   :  { %v617_v1 = vadd.f32 1.0, %v1954_v0 }
 0x830   :  { %v619_v6 = vmul.f32 %v617_v1, %v603_v3 }
 0x831   :  { %v1956_v2 = vpop.eup %1955 }
 0x832   :  { %v618_v5 = vadd.f32 1.0, %v1956_v2 }
 0x834   :  { %v620_v7 = vmul.f32 %v618_v5, %v604_v4 }
 0x836   :  { %v630_v8 = vpack.c.bf16 %v620_v7, %v619_v6 }
 0x838   :  { %1812 = vmatmul.mubr.msk.bf16.vlgmr.msra.gmra.mxu0 %vm659_vm3, %v630_v8 }
 0x839   :  { %1831 = vmatprep.mubr.msk.bf16.mxu0 %vm2020_vm1, %v2019_v15 }
 0x8f8   :  { %v697_v10 = vpop.f32.mrf.mxu0 }
 0x8f9   :  { %v698_v11 = vadd.f32 %v1654_v9, %v697_v10 }
 0x8fa   :  { %v1813_v12 = vpop.f32.mrf.mxu0 }
 0x8fb   :  { %v704_v13 = vadd.f32 %v698_v11, %v535_v38 }
 0x8fc   :  { %v700_v14 = vpop.f32.mrf.mxu0 }
 0x8fd   :  { %v701_v16 = vadd.f32 %v1654_v9, %v700_v14  ;;  %v708_v17 = vsel %vm25_vm0, %v704_v13, 0.0 }
 0x8fe   :  { %709 = vadd.xlane.f32.xlu1 %v708_v17  ;;  %v1814_v18 = vpop.f32.mrf.mxu0 }
 0x8ff   :  { %v705_v19 = vadd.f32 %v701_v16, %v536_v39 }
 0x901   :  { %v711_v31 = vsel %vm25_vm0, %v705_v19, 0.0 }
 0x902   :  { %712 = vadd.xlane.f32.xlu0 %v711_v31 }
 0x987   :  { %v710_v20 = vpop.xlane.xlu1 %709 }
 0x988   :  { %v714_v32 = vmul.f32 0.03125, %v710_v20 }
 0x98a   :  { %v716_v21 = vsub.f32 %v704_v13, %v714_v32 }
 0x98b   :  { %v713_v22 = vpop.xlane.xlu0 %712 }
 0x98c   :  { %v715_v23 = vmul.f32 0.03125, %v713_v22  ;;  %v718_v24 = vmul.f32 %v716_v21, %v716_v21 }
 0x98e   :  { %v717_v25 = vsub.f32 %v705_v19, %v715_v23  ;;  %v720_v26 = vsel %vm25_vm0, %v718_v24, 0.0 }
 0x98f   :  { %721 = vadd.xlane.f32.xlu1 %v720_v26 }
 0x990   :  { %v719_v27 = vmul.f32 %v717_v25, %v717_v25 }
 0x992   :  { %v723_v28 = vsel %vm25_vm0, %v719_v27, 0.0 }
 0x993   :  { %724 = vadd.xlane.f32.xlu0 %v723_v28 }
 0xa18   :  { %v722_v33 = vpop.xlane.xlu1 %721 }
 0xa19   :  { %v726_v34 = vmul.f32 0.03125, %v722_v33 }
 0xa1b   :  { %v728_v35 = vadd.f32 1e-12, %v726_v34 }
 0xa1c   :  { %v725_v36 = vpop.xlane.xlu0 %724 }
 0xa1d   :  { %1957 = vrsqrt.f32 %v728_v35  ;;  %v727_v37 = vmul.f32 0.03125, %v725_v36 }
 0xa1f   :  { %v729_v38 = vadd.f32 1e-12, %v727_v37 }
 0xa21   :  { %1959 = vrsqrt.f32 %v729_v38 }
 0xa2a   :  { %v1958_v39 = vpop.eup %1957 }
 0xa2b   :  { %v732_v40 = vmul.f32 %v1958_v39, %v716_v21 }
 0xa2d   :  { %v738_v44 = vmul.f32 %v1660_v41, %v732_v40 }
 0xa2e   :  { %v1960_v42 = vpop.eup %1959 }
 0xa2f   :  { %v733_v43 = vmul.f32 %v1960_v42, %v717_v25  ;;  %v2232_v47 = vadd.f32 %v1661_v45, %v738_v44 }
 0xa31   :  { %v739_v46 = vmul.f32 %v1660_v41, %v733_v43 }
 0xa33   :  { %v2234_v49 = vadd.f32 %v1661_v45, %v739_v46 }
 0xa35   :  { %v751_v50 = vpack.c.bf16 %v2234_v49, %v2232_v47 }
 0xa37   :  { %1820 = vmatmul.mubr.msk.bf16.vlgmr.msra.gmra.mxu1 %vm25_vm0, %v751_v50 }
 0xa38   :  { %1825 = vmatprep.mubr.msk.bf16.mxu1 %vm2020_vm1, %v2019_v15 }
 0xaf7   :  { %v805_v51 = vpop.f32.mrf.mxu1 }
 0xaf8   :  { %v806_v56 = vadd.f32 %v1662_v52, %v805_v51 }
 0xaf9   :  { %v1821_v54 = vpop.f32.mrf.mxu1 }
 0xafb   :  { %v808_v55 = vpop.f32.mrf.mxu1 }
 0xafc   :  { %v809_v57 = vadd.f32 %v1662_v52, %v808_v55 }
 0xafd   :  { %v1822_v58 = vpop.f32.mrf.mxu1 }
 0xafe   :  { %v2244_v59 = vpack.c.bf16 %v809_v57, %v806_v56 }
 0xb00   :  { %944 = vrot.lane.b32.xlu0 %v2244_v59, %s2021_s28  ;;  %818 = vrot.lane.b32.xlu1 %v2244_v59, %s2022_s29 }
 0xb04   :  { %942 = vrot.lane.b32.xlu1 %v2244_v59, %s2023_s30 }
 0xb72   :  { %v819_v60 = vpop.permute.xlu1 %818  ;;  %v945_v62 = vpop.permute.xlu0 %944 }
 0xb73   :  { %v824_v61 = vsel %vm139_vm2, %v819_v60, 0  ;;  %v950_v63 = vsel %vm139_vm2, %v945_v62, 0  ;;  %v1917_v60 = vld [vmem:[%s2400_s3 + $0x60] sm:$0xff]  }
 0xb74   :  { %1824 = vmatpush3.bf16.xpose.msra.mxu1 %v824_v61  ;;  %v1918_v61 = vld [vmem:[%s2400_s3 + $0x68] sm:$0xff]  }
 0xb75   :  { %1835 = vmatprep.subr.bf16.mxu1 %v2019_v15 }
 0xb76   :  { %v943_v0 = vpop.permute.xlu1 %942 }
 0xb7b   :  { %1826 = vmatmul.mubr.msk.bf16.vlgmr.msra.gmra.mxu1 %vm139_vm2, %v2244_v59 }
 0xb7c   :  { %1836 = vmatpush3.bf16.xpose.msra.mxu1 %v950_v63  ;;  %1837 = vmatprep.mubr.msk.bf16.mxu1 %vm2020_vm1, %v2019_v15 }
 0xb7d   :  { %1847 = vmatprep.subr.bf16.mxu1 %v2019_v15 }
 0xb83   :  { %1838 = vmatmul.mubr.msk.bf16.vlgmr.msra.gmra.mxu1 %vm139_vm2, %v943_v0 }
 0xb84   :  { %1849 = vmatprep.mubr.msk.bf16.mxu1 %vm2020_vm1, %v2019_v15  ;;  %1848 = vmatpush3.bf16.msra.mxu1 %v1918_v61 }
 0xb85   :  { %1859 = vmatprep.subr.bf16.mxu1 %v2019_v15 }
 0xc3b   :  { %v860_v1 = vpop.f32.mrf.mxu1 }
 0xc3c   :  { %v867_v2 = vmul.f32 0.25, %v860_v1 }
 0xc3d   :  { %v1827_v3 = vpop.f32.mrf.mxu1 }
 0xc3e   :  { %v869_v4 = vadd.f32 %v867_v2, %v2118_v48 }
 0xc3f   :  { %v863_v5 = vpop.f32.mrf.mxu1 }
 0xc40   :  { %v868_v6 = vmul.f32 0.25, %v863_v5  ;;  %v871_v7 = vsel %vm139_vm2, %v869_v4, -inf }
 0xc41   :  { %872 = vmax.xlane.f32.xlu1 %v871_v7  ;;  %v1828_v8 = vpop.f32.mrf.mxu1 }
 0xc42   :  { %v870_v9 = vadd.f32 %v868_v6, %v2124_v53 }
 0xc43   :  { %v986_v10 = vpop.f32.mrf.mxu1 }
 0xc44   :  { %v993_v11 = vmul.f32 0.25, %v986_v10  ;;  %v874_v12 = vsel %vm139_vm2, %v870_v9, -inf }
 0xc45   :  { %875 = vmax.xlane.f32.xlu0 %v874_v12  ;;  %v1839_v13 = vpop.f32.mrf.mxu1 }
 0xc46   :  { %v995_v14 = vadd.f32 %v993_v11, %v2118_v48  ;;  %v1674_v13 = vld [vmem:[%s2399_s2 + $0xb] ss:$0 sm:$0xff] }
 0xc47   :  { %v989_v16 = vpop.f32.mrf.mxu1 }
 0xc48   :  { %v994_v17 = vmul.f32 0.25, %v989_v16  ;;  %v997_v18 = vsel %vm139_vm2, %v995_v14, -inf }
 0xc49   :  { %998 = vmax.xlane.f32.xlu0 %v997_v18  ;;  %v1840_v19 = vpop.f32.mrf.mxu1 }
 0xc4a   :  { %v996_v31 = vadd.f32 %v994_v17, %v2124_v53 }
 0xc4c   :  { %v1000_v20 = vsel %vm139_vm2, %v996_v31, -inf }
 0xc4d   :  { %1001 = vmax.xlane.f32.xlu1 %v1000_v20 }
 0xcca   :  { %v873_v32 = vpop.xlane.xlu1 %872 }
 0xccb   :  { %v877_v21 = vsub.f32 %v869_v4, %v873_v32 }
 0xccd   :  { %v879_v22 = vmul.f32 1.442695, %v877_v21 }
 0xcce   :  { %v876_v23 = vpop.xlane.xlu0 %875 }
 0xccf   :  { %1961 = vpow2.f32 %v879_v22  ;;  %v878_v24 = vsub.f32 %v870_v9, %v876_v23 }
 0xcd1   :  { %v881_v25 = vmul.f32 1.442695, %v878_v24 }
 0xcd2   :  { %v999_v26 = vpop.xlane.xlu0 %998 }
 0xcd3   :  { %1963 = vpow2.f32 %v881_v25  ;;  %v1003_v48 = vsub.f32 %v995_v14, %v999_v26 }
 0xcd5   :  { %v1005_v27 = vmul.f32 1.442695, %v1003_v48 }
 0xcd6   :  { %v1002_v28 = vpop.xlane.xlu1 %1001 }
 0xcd7   :  { %1965 = vpow2.f32 %v1005_v27  ;;  %v1004_v29 = vsub.f32 %v996_v31, %v1002_v28 }
 0xcd9   :  { %v1007_v30 = vmul.f32 1.442695, %v1004_v29 }
 0xcdb   :  { %1967 = vpow2.f32 %v1007_v30 }
 0xcdc   :  { %v1962_v53 = vpop.eup %1961 }
 0xcdd   :  { %v883_v33 = vsel %vm139_vm2, %v1962_v53, 0.0 }
 0xcde   :  { %884 = vadd.xlane.f32.xlu0 %v883_v33  ;;  %v1920_v33 = vld [vmem:[%s2400_s3 + $0x70] sm:$0xff]  }
 0xce0   :  { %v1964_v34 = vpop.eup %1963 }
 0xce1   :  { %v886_v35 = vsel %vm139_vm2, %v1964_v34, 0.0 }
 0xce2   :  { %887 = vadd.xlane.f32.xlu1 %v886_v35 }
 0xce4   :  { %v1966_v36 = vpop.eup %1965 }
 0xce5   :  { %v1009_v37 = vsel %vm139_vm2, %v1966_v36, 0.0 }
 0xce6   :  { %1010 = vadd.xlane.f32.xlu0 %v1009_v37 }
 0xce8   :  { %v1968_v38 = vpop.eup %1967 }
 0xce9   :  { %v1012_v39 = vsel %vm139_vm2, %v1968_v38, 0.0 }
 0xcea   :  { %1013 = vadd.xlane.f32.xlu1 %v1012_v39 }
 0xcfb   :  { %1020 = vrot.lane.b32.xlu1 %v2244_v59, %s2025_s9 }
 0xcfc   :  { %894 = vrot.lane.b32.xlu0 %v2244_v59, %s2024_s1 }
 0xd67   :  { %v885_v40 = vpop.xlane.xlu0 %884 }
 0xd68   :  { %1969 = vrcp.f32 %v885_v40 }
 0xd6b   :  { %v888_v41 = vpop.xlane.xlu1 %887 }
 0xd6c   :  { %1971 = vrcp.f32 %v888_v41 }
 0xd6f   :  { %v1011_v42 = vpop.xlane.xlu0 %1010 }
 0xd70   :  { %1973 = vrcp.f32 %v1011_v42  ;;  %v1675_v42 = vld [vmem:[%s2399_s2 + $0xc] ss:$0 sm:$0xff] }
 0xd73   :  { %v895_v43 = vpop.permute.xlu0 %894  ;;  %v1014_v44 = vpop.xlane.xlu1 %1013 }
 0xd74   :  { %1975 = vrcp.f32 %v1014_v44  ;;  %1830 = vmatpush3.bf16.msra.mxu0 %v895_v43 }
 0xd75   :  { %1841 = vmatprep.subr.bf16.mxu0 %v2019_v15  ;;  %v1970_v45 = vpop.eup %1969 }
 0xd76   :  { %v891_v50 = vmul.f32 %v1970_v45, %v1962_v53 }
 0xd77   :  { %v1021_v54 = vpop.permute.xlu1 %1020 }
 0xd79   :  { %v1972_v46 = vpop.eup %1971 }
 0xd7a   :  { %v892_v51 = vmul.f32 %v1972_v46, %v1964_v34  ;;  %v1676_v46 = vld [vmem:[%s2399_s2 + $0xd] ss:$0 sm:$0xff] }
 0xd7c   :  { %v893_v52 = vpack.c.bf16 %v892_v51, %v891_v50 }
 0xd7d   :  { %v1974_v55 = vpop.eup %1973 }
 0xd7e   :  { %1832 = vmatmul.mubr.msk.bf16.vlgmr.msra.gmra.mxu0 %vm139_vm2, %v893_v52  ;;  %v1017_v57 = vmul.f32 %v1974_v55, %v1966_v36  ;;  %v1921_v55 = vld [vmem:[%s2400_s3 + $0x98] sm:$0xff]  }
 0xd7f   :  { %1842 = vmatpush3.bf16.msra.mxu0 %v1021_v54  ;;  %1843 = vmatprep.mubr.msk.bf16.mxu0 %vm2020_vm1, %v2019_v15 }
 0xd80   :  { %1853 = vmatprep.subr.bf16.mxu0 %v2019_v15 }
 0xd81   :  { %v1976_v56 = vpop.eup %1975 }
 0xd82   :  { %v1018_v58 = vmul.f32 %v1976_v56, %v1968_v38  ;;  %v1922_v56 = vld [vmem:[%s2400_s3 + $0x90] sm:$0xff]  }
 0xd84   :  { %v1019_v59 = vpack.c.bf16 %v1018_v58, %v1017_v57  ;;  %v1923_v57 = vld [vmem:[%s2400_s3 + $0x88] sm:$0xff]   ;;  %v1924_v58 = vld [vmem:[%s2400_s3 + $0x80] sm:$0xff]  }
 0xd86   :  { %1844 = vmatmul.mubr.msk.bf16.vlgmr.msra.gmra.mxu0 %vm139_vm2, %v1019_v59  ;;  %v1677_v59 = vld [vmem:[%s2399_s2 + $0xe] ss:$0 sm:$0xff] }
 0xd87   :  { %1855 = vmatprep.mubr.msk.bf16.mxu0 %vm2020_vm1, %v2019_v15  ;;  %1854 = vmatpush3.bf16.msra.mxu0 %v1917_v60 }
 0xd88   :  { %1867 = vmatprep.subr.bf16.mxu0 %v2019_v15 }
 0xe3e   :  { %v934_v62 = vpop.f32.mrf.mxu0 }
 0xe40   :  { %v1833_v63 = vpop.f32.mrf.mxu0 }
 0xe42   :  { %v937_v0 = vpop.f32.mrf.mxu0 }
 0xe43   :  { %v941_v1 = vpack.c.bf16 %v937_v0, %v934_v62 }
 0xe44   :  { %v1834_v2 = vpop.f32.mrf.mxu0 }
 0xe45   :  { %1856 = vmatmul.mubr.msk.bf16.vlgmr.msra.gmra.mxu0 %vm139_vm2, %v941_v1 }
 0xe46   :  { %v1060_v3 = vpop.f32.mrf.mxu0  ;;  %1875 = vmatprep.mubr.msk.bf16.mxu0 %vm2020_vm1, %v2019_v15  ;;  %1868 = vmatpush3.bf16.msra.mxu0 %v1921_v55 }
 0xe47   :  { %1869 = vmatprep.subr.bf16.mxu0 %v2019_v15 }
 0xe48   :  { %v1845_v4 = vpop.f32.mrf.mxu0 }
 0xe4a   :  { %v1063_v5 = vpop.f32.mrf.mxu0  ;;  %1870 = vmatpush3.bf16.msra.mxu0 %v1922_v56 }
 0xe4b   :  { %v1067_v6 = vpack.c.bf16 %v1063_v5, %v1060_v3  ;;  %1871 = vmatprep.subr.bf16.mxu0 %v2019_v15 }
 0xe4c   :  { %v1846_v7 = vpop.f32.mrf.mxu0 }
 0xe4d   :  { %1850 = vmatmul.mubr.msk.bf16.vlgmr.msra.gmra.mxu1 %vm139_vm2, %v1067_v6 }
 0xe4e   :  { %1863 = vmatprep.mubr.msk.bf16.mxu1 %vm2020_vm1, %v2019_v15  ;;  %1872 = vmatpush3.bf16.msra.mxu0 %v1923_v57  ;;  %v1688_v57 = vld [vmem:[%s2399_s2 + $0x11] ss:$0 sm:$0xff] }
 0xe4f   :  { %1873 = vmatprep.subr.bf16.mxu0 %v2019_v15 }
 0xe52   :  { %1874 = vmatpush3.bf16.msra.mxu0 %v1924_v58 }
 0xf05   :  { %v1161_v8 = vpop.f32.mrf.mxu0 }
 0xf07   :  { %v1857_v9 = vpop.f32.mrf.mxu0 }
 0xf09   :  { %v1164_v10 = vpop.f32.mrf.mxu0 }
 0xf0b   :  { %v1858_v11 = vpop.f32.mrf.mxu0 }
 0xf0d   :  { %v1111_v12 = vpop.f32.mrf.mxu1 }
 0xf0e   :  { %v1162_v14 = vadd.f32 %v1161_v8, %v1111_v12 }
 0xf0f   :  { %v1851_v16 = vpop.f32.mrf.mxu1 }
 0xf10   :  { %v1173_v17 = vadd.f32 %v1674_v13, %v1162_v14 }
 0xf11   :  { %v1114_v18 = vpop.f32.mrf.mxu1 }
 0xf12   :  { %v1165_v19 = vadd.f32 %v1164_v10, %v1114_v18  ;;  %v1175_v31 = vadd.f32 %v1173_v17, %v2232_v47 }
 0xf13   :  { %v1852_v20 = vpop.f32.mrf.mxu1 }
 0xf14   :  { %v1174_v32 = vadd.f32 %v1674_v13, %v1165_v19  ;;  %v1179_v21 = vsel %vm25_vm0, %v1175_v31, 0.0 }
 0xf15   :  { %1180 = vadd.xlane.f32.xlu1 %v1179_v21 }
 0xf16   :  { %v1176_v22 = vadd.f32 %v1174_v32, %v2234_v49  ;;  %v1919_v49 = vld [vmem:[%s2400_s3 + $0x78] sm:$0xff]   ;;  %v1681_v32 = vld [vmem:[%s2399_s2 + $0xf] ss:$0 sm:$0xff] }
 0xf17   :  { %1860 = vmatpush3.bf16.msra.mxu1 %v1919_v49 }
 0xf18   :  { %v1182_v23 = vsel %vm25_vm0, %v1176_v22, 0.0  ;;  %1861 = vmatprep.subr.bf16.mxu1 %v2019_v15 }
 0xf19   :  { %1183 = vadd.xlane.f32.xlu0 %v1182_v23 }
 0xf1b   :  { %1862 = vmatpush3.bf16.msra.mxu1 %v1920_v33 }
 0xf1c   :  { %1879 = vmatprep.subr.bf16.mxu1 %v2019_v15 }
 0xf9e   :  { %v1181_v24 = vpop.xlane.xlu1 %1180 }
 0xf9f   :  { %v1185_v25 = vmul.f32 0.03125, %v1181_v24 }
 0xfa1   :  { %v1187_v26 = vsub.f32 %v1175_v31, %v1185_v25 }
 0xfa2   :  { %v1184_v48 = vpop.xlane.xlu0 %1183 }
 0xfa3   :  { %v1186_v27 = vmul.f32 0.03125, %v1184_v48  ;;  %v1189_v28 = vmul.f32 %v1187_v26, %v1187_v26 }
 0xfa5   :  { %v1188_v29 = vsub.f32 %v1176_v22, %v1186_v27  ;;  %v1191_v30 = vsel %vm25_vm0, %v1189_v28, 0.0 }
 0xfa6   :  { %1192 = vadd.xlane.f32.xlu0 %v1191_v30 }
 0xfa7   :  { %v1190_v47 = vmul.f32 %v1188_v29, %v1188_v29 }
 0xfa9   :  { %v1194_v53 = vsel %vm25_vm0, %v1190_v47, 0.0 }
 0xfaa   :  { %1195 = vadd.xlane.f32.xlu1 %v1194_v53 }
0x102f   :  { %v1193_v34 = vpop.xlane.xlu0 %1192 }
0x1030   :  { %v1197_v35 = vmul.f32 0.03125, %v1193_v34 }
0x1032   :  { %v1199_v36 = vadd.f32 1e-12, %v1197_v35 }
0x1033   :  { %v1196_v37 = vpop.xlane.xlu1 %1195 }
0x1034   :  { %1977 = vrsqrt.f32 %v1199_v36  ;;  %v1198_v38 = vmul.f32 0.03125, %v1196_v37 }
0x1036   :  { %v1200_v39 = vadd.f32 1e-12, %v1198_v38 }
0x1038   :  { %1979 = vrsqrt.f32 %v1200_v39  ;;  %v1925_v39 = vld [vmem:[%s2400_s3 + $0xa8] sm:$0xff]  }
0x1041   :  { %v1978_v40 = vpop.eup %1977 }
0x1042   :  { %v1203_v41 = vmul.f32 %v1978_v40, %v1187_v26  ;;  %v1926_v40 = vld [vmem:[%s2400_s3 + $0xa0] sm:$0xff]  }
0x1044   :  { %v1209_v45 = vmul.f32 %v1675_v42, %v1203_v41 }
0x1045   :  { %v1980_v43 = vpop.eup %1979 }
0x1046   :  { %v1204_v44 = vmul.f32 %v1980_v43, %v1188_v29  ;;  %v1215_v51 = vadd.f32 %v1676_v46, %v1209_v45 }
0x1048   :  { %v1210_v50 = vmul.f32 %v1675_v42, %v1204_v44 }
0x104a   :  { %v1216_v52 = vadd.f32 %v1676_v46, %v1210_v50 }
0x104c   :  { %v1222_v54 = vpack.c.bf16 %v1216_v52, %v1215_v51 }
0x104e   :  { %1864 = vmatmul.mubr.msk.bf16.vlgmr.msra.gmra.mxu1 %vm25_vm0, %v1222_v54 }
0x104f   :  { %1883 = vmatprep.mubr.msk.bf16.mxu1 %vm2020_vm1, %v2019_v15  ;;  %1880 = vmatpush3.bf16.msra.mxu1 %v1925_v39 }
0x1050   :  { %1881 = vmatprep.subr.bf16.mxu1 %v2019_v15 }
0x1053   :  { %1882 = vmatpush3.bf16.msra.mxu1 %v1926_v40 }
0x1054   :  { %1887 = vmatprep.subr.bf16.mxu1 %v2019_v15 }
0x110e   :  { %v1276_v60 = vpop.f32.mrf.mxu1 }
0x110f   :  { %v1277_v61 = vadd.f32 %v1677_v59, %v1276_v60 }
0x1110   :  { %v1865_v62 = vpop.f32.mrf.mxu1 }
0x1111   :  { %v1285_v63 = vmul.f32 0.044715, %v1277_v61  ;;  %v1283_v16 = vmul.f32 0.5, %v1277_v61  ;;  %v1689_v62 = vld [vmem:[%s2399_s2 + $0x12] ss:$0 sm:$0xff] }
0x1112   :  { %v1279_v0 = vpop.f32.mrf.mxu1 }
0x1113   :  { %v1287_v1 = vmul.f32 %v1285_v63, %v1277_v61  ;;  %v1280_v2 = vadd.f32 %v1677_v59, %v1279_v0 }
0x1114   :  { %v1866_v3 = vpop.f32.mrf.mxu1 }
0x1115   :  { %v1289_v4 = vmul.f32 %v1287_v1, %v1277_v61  ;;  %v1286_v5 = vmul.f32 0.044715, %v1280_v2  ;;  %v1284_v17 = vmul.f32 0.5, %v1280_v2 }
0x1117   :  { %v1291_v6 = vadd.f32 %v1289_v4, %v1277_v61  ;;  %v1288_v7 = vmul.f32 %v1286_v5, %v1280_v2 }
0x1119   :  { %v1293_v8 = vmul.f32 0.7978846, %v1291_v6  ;;  %v1290_v9 = vmul.f32 %v1288_v7, %v1280_v2 }
0x111b   :  { %1981 = vtanh.f32 %v1293_v8  ;;  %v1292_v10 = vadd.f32 %v1290_v9, %v1280_v2 }
0x111d   :  { %v1294_v11 = vmul.f32 0.7978846, %v1292_v10 }
0x111f   :  { %1983 = vtanh.f32 %v1294_v11 }
0x1128   :  { %v1982_v12 = vpop.eup %1981 }
0x1129   :  { %v1297_v13 = vadd.f32 1.0, %v1982_v12 }
0x112b   :  { %v1299_v19 = vmul.f32 %v1297_v13, %v1283_v16 }
0x112c   :  { %v1984_v14 = vpop.eup %1983 }
0x112d   :  { %v1298_v18 = vadd.f32 1.0, %v1984_v14 }
0x112f   :  { %v1300_v31 = vmul.f32 %v1298_v18, %v1284_v17 }
0x1131   :  { %v1310_v20 = vpack.c.bf16 %v1300_v31, %v1299_v19 }
0x1133   :  { %1876 = vmatmul.mubr.msk.bf16.vlgmr.msra.gmra.mxu0 %vm659_vm3, %v1310_v20 }
0x11f3   :  { %v1376_v21 = vpop.f32.mrf.mxu0 }
0x11f4   :  { %v1377_v22 = vadd.f32 %v1681_v32, %v1376_v21 }
0x11f5   :  { %v1877_v23 = vpop.f32.mrf.mxu0 }
0x11f6   :  { %v1383_v24 = vadd.f32 %v1377_v22, %v1215_v51 }
0x11f7   :  { %v1379_v25 = vpop.f32.mrf.mxu0 }
0x11f8   :  { %v1380_v26 = vadd.f32 %v1681_v32, %v1379_v25  ;;  %v1387_v48 = vsel %vm25_vm0, %v1383_v24, 0.0 }
0x11f9   :  { %1388 = vadd.xlane.f32.xlu0 %v1387_v48  ;;  %v1878_v27 = vpop.f32.mrf.mxu0 }
0x11fa   :  { %v1384_v28 = vadd.f32 %v1380_v26, %v1216_v52  ;;  %v1687_v52 = vld [vmem:[%s2399_s2 + $0x10] ss:$0 sm:$0xff] }
0x11fc   :  { %v1390_v29 = vsel %vm25_vm0, %v1384_v28, 0.0 }
0x11fd   :  { %1391 = vadd.xlane.f32.xlu1 %v1390_v29 }
0x1282   :  { %v1389_v30 = vpop.xlane.xlu0 %1388 }
0x1283   :  { %v1393_v47 = vmul.f32 0.03125, %v1389_v30 }
0x1285   :  { %v1395_v53 = vsub.f32 %v1383_v24, %v1393_v47 }
0x1286   :  { %v1392_v49 = vpop.xlane.xlu1 %1391 }
0x1287   :  { %v1394_v33 = vmul.f32 0.03125, %v1392_v49  ;;  %v1397_v34 = vmul.f32 %v1395_v53, %v1395_v53  ;;  %v1927_v49 = vld [vmem:[%s2400_s3 + $0xb8] sm:$0xff]  }
0x1289   :  { %v1396_v35 = vsub.f32 %v1384_v28, %v1394_v33  ;;  %v1399_v36 = vsel %vm25_vm0, %v1397_v34, 0.0  ;;  %v1928_v33 = vld [vmem:[%s2400_s3 + $0xb0] sm:$0xff]  }
0x128a   :  { %1400 = vadd.xlane.f32.xlu0 %v1399_v36 }
0x128b   :  { %v1398_v37 = vmul.f32 %v1396_v35, %v1396_v35 }
0x128d   :  { %v1402_v38 = vsel %vm25_vm0, %v1398_v37, 0.0 }
0x128e   :  { %1403 = vadd.xlane.f32.xlu1 %v1402_v38 }
0x1313   :  { %v1401_v41 = vpop.xlane.xlu0 %1400 }
0x1314   :  { %v1405_v42 = vmul.f32 0.03125, %v1401_v41 }
0x1316   :  { %v1407_v43 = vadd.f32 1e-12, %v1405_v42  ;;  %v1693_v42 = vld [vmem:[%s2399_s2 + $0x13] ss:$0 sm:$0xff] }
0x1317   :  { %v1404_v44 = vpop.xlane.xlu1 %1403 }
0x1318   :  { %1985 = vrsqrt.f32 %v1407_v43  ;;  %v1406_v45 = vmul.f32 0.03125, %v1404_v44 }
0x131a   :  { %v1408_v46 = vadd.f32 1e-12, %v1406_v45 }
0x131c   :  { %1987 = vrsqrt.f32 %v1408_v46 }
0x1325   :  { %v1986_v50 = vpop.eup %1985 }
0x1326   :  { %v1411_v51 = vmul.f32 %v1986_v50, %v1395_v53 }
0x1328   :  { %v1417_v56 = vmul.f32 %v1687_v52, %v1411_v51 }
0x1329   :  { %v1988_v54 = vpop.eup %1987 }
0x132a   :  { %v1412_v55 = vmul.f32 %v1988_v54, %v1396_v35  ;;  %v1423_v59 = vadd.f32 %v1688_v57, %v1417_v56  ;;  %v1695_v54 = vld [vmem:[%s2399_s2 + $0x15] ss:$0 sm:$0xff] }
0x132c   :  { %v1418_v58 = vmul.f32 %v1687_v52, %v1412_v55 }
0x132e   :  { %v1424_v60 = vadd.f32 %v1688_v57, %v1418_v58 }
0x1330   :  { %v1430_v61 = vpack.c.bf16 %v1424_v60, %v1423_v59 }
0x1332   :  { %1884 = vmatmul.mubr.msk.bf16.vlgmr.msra.gmra.mxu1 %vm25_vm0, %v1430_v61 }
0x1333   :  { %1891 = vmatprep.mubr.msk.bf16.mxu1 %vm2020_vm1, %v2019_v15  ;;  %1888 = vmatpush3.bf16.msra.mxu1 %v1927_v49 }
0x1334   :  { %1889 = vmatprep.subr.bf16.mxu1 %v2019_v15  ;;  %v1694_v15 = vld [vmem:[%s2399_s2 + $0x14] ss:$0 sm:$0xff] }
0x1337   :  { %1890 = vmatpush3.bf16.msra.mxu1 %v1928_v33 }
0x13f2   :  { %v1484_v63 = vpop.f32.mrf.mxu1 }
0x13f3   :  { %v1485_v0 = vadd.f32 %v1689_v62, %v1484_v63 }
0x13f4   :  { %v1885_v1 = vpop.f32.mrf.mxu1 }
0x13f5   :  { %v1493_v2 = vmul.f32 0.044715, %v1485_v0  ;;  %v1491_v17 = vmul.f32 0.5, %v1485_v0 }
0x13f6   :  { %v1487_v3 = vpop.f32.mrf.mxu1 }
0x13f7   :  { %v1488_v4 = vadd.f32 %v1689_v62, %v1487_v3  ;;  %v1495_v5 = vmul.f32 %v1493_v2, %v1485_v0 }
0x13f8   :  { %v1886_v6 = vpop.f32.mrf.mxu1 }
0x13f9   :  { %v1494_v7 = vmul.f32 0.044715, %v1488_v4  ;;  %v1497_v8 = vmul.f32 %v1495_v5, %v1485_v0  ;;  %v1492_v32 = vmul.f32 0.5, %v1488_v4 }
0x13fb   :  { %v1499_v9 = vadd.f32 %v1497_v8, %v1485_v0  ;;  %v1496_v10 = vmul.f32 %v1494_v7, %v1488_v4 }
0x13fd   :  { %v1501_v11 = vmul.f32 0.7978846, %v1499_v9  ;;  %v1498_v12 = vmul.f32 %v1496_v10, %v1488_v4 }
0x13ff   :  { %1989 = vtanh.f32 %v1501_v11  ;;  %v1500_v13 = vadd.f32 %v1498_v12, %v1488_v4 }
0x1401   :  { %v1502_v14 = vmul.f32 0.7978846, %v1500_v13 }
0x1403   :  { %1991 = vtanh.f32 %v1502_v14 }
0x140c   :  { %v1990_v16 = vpop.eup %1989 }
0x140d   :  { %v1505_v18 = vadd.f32 1.0, %v1990_v16 }
0x140f   :  { %v1507_v19 = vmul.f32 %v1505_v18, %v1491_v17 }
0x1410   :  { %v1992_v31 = vpop.eup %1991 }
0x1411   :  { %v1511_v20 = vsel %vm25_vm0, %v1507_v19, 0.0  ;;  %v1506_v21 = vadd.f32 1.0, %v1992_v31 }
0x1412   :  { %1512 = vadd.xlane.f32.xlu0 %v1511_v20 }
0x1413   :  { %v1508_v22 = vmul.f32 %v1506_v21, %v1492_v32 }
0x1415   :  { %v1514_v23 = vsel %vm25_vm0, %v1508_v22, 0.0 }
0x1416   :  { %1515 = vadd.xlane.f32.xlu1 %v1514_v23 }
0x149b   :  { %v1513_v24 = vpop.xlane.xlu0 %1512 }
0x149c   :  { %v1517_v25 = vmul.f32 0.03125, %v1513_v24 }
0x149e   :  { %v1519_v26 = vsub.f32 %v1507_v19, %v1517_v25 }
0x149f   :  { %v1516_v48 = vpop.xlane.xlu1 %1515 }
0x14a0   :  { %v1518_v27 = vmul.f32 0.03125, %v1516_v48  ;;  %v1521_v28 = vmul.f32 %v1519_v26, %v1519_v26 }
0x14a2   :  { %v1520_v29 = vsub.f32 %v1508_v22, %v1518_v27  ;;  %v1523_v30 = vsel %vm25_vm0, %v1521_v28, 0.0 }
0x14a3   :  { %1524 = vadd.xlane.f32.xlu0 %v1523_v30 }
0x14a4   :  { %v1522_v47 = vmul.f32 %v1520_v29, %v1520_v29 }
0x14a6   :  { %v1526_v53 = vsel %vm25_vm0, %v1522_v47, 0.0 }
0x14a7   :  { %1527 = vadd.xlane.f32.xlu1 %v1526_v53 }
0x152c   :  { %v1525_v34 = vpop.xlane.xlu0 %1524 }
0x152d   :  { %v1529_v35 = vmul.f32 0.03125, %v1525_v34 }
0x152f   :  { %v1531_v36 = vadd.f32 1e-12, %v1529_v35 }
0x1530   :  { %v1528_v37 = vpop.xlane.xlu1 %1527 }
0x1531   :  { %1993 = vrsqrt.f32 %v1531_v36  ;;  %v1530_v38 = vmul.f32 0.03125, %v1528_v37 }
0x1533   :  { %v1532_v39 = vadd.f32 1e-12, %v1530_v38 }
0x1535   :  { %1995 = vrsqrt.f32 %v1532_v39 }
0x153e   :  { %v1994_v40 = vpop.eup %1993 }
0x153f   :  { %v1535_v41 = vmul.f32 %v1994_v40, %v1519_v26 }
0x1541   :  { %v1541_v45 = vmul.f32 %v1693_v42, %v1535_v41 }
0x1542   :  { %v1996_v43 = vpop.eup %1995 }
0x1543   :  { %v1536_v44 = vmul.f32 %v1996_v43, %v1520_v29  ;;  %v1547_v50 = vadd.f32 %v1694_v15, %v1541_v45 }
0x1545   :  { %v1542_v46 = vmul.f32 %v1693_v42, %v1536_v44 }
0x1547   :  { %v1548_v51 = vadd.f32 %v1694_v15, %v1542_v46 }
0x1549   :  { %v1554_v52 = vpack.c.bf16 %v1548_v51, %v1547_v50 }
0x154b   :  { %1892 = vmatmul.mubr.msk.bf16.vlgmr.msra.gmra.mxu1 %vm25_vm0, %v1554_v52 }
0x160b   :  { %v1608_v55 = vpop.f32.mrf.mxu1 }
0x160c   :  { %v1609_v56 = vadd.f32 %v1695_v54, %v1608_v55 }
0x160d   :  { %v1893_v57 = vpop.f32.mrf.mxu1 }
0x160e   :  { %1615 = vst [vmem:[#allocation2] sm:$0xff] %v1609_v56 }
0x160f   :  { %v1611_v58 = vpop.f32.mrf.mxu1 }
0x1610   :  { %v1612_v59 = vadd.f32 %v1695_v54, %v1611_v58 }
0x1611   :  { %v1894_v60 = vpop.f32.mrf.mxu1 }
0x1612   :  { %1616 = vst [vmem:[#allocation2 + $0x8] sm:$0xff] %v1612_v59 }
0x1613   :  { %2008 = shalt.err (!%p2005_p4)
}
0x1614   :  { %s2027_s15 = smov 128   ;;  %s2028_s2 = smov 8  }
0x1615   :  { %1628 = dma.vmem_to_hbm [thread:$0]  %s1623_s13, 256, %s2401_s4, [#allocation3], %s2027_s15, %s2027_s15, %s2028_s2  }
0x1616   :  { %2017 = dma.done.wait [#allocation3], 256  }
0x1617   :  { %2018 = vsyncadd [#allocation3], 4294967040 }
0x1618   :  { %1632 = vsyncpa [#allocation3], 1 }

</bundles_post_ra>
